<compile_context>
chip_gen: v6e
topology: v6e:2x2x1
jax: 0.10.0
libtpu: 0.0.40
codegen_flags: <defaults>
</compile_context>

<pallas_src>
import jax
import jax.numpy as jnp
from jax import lax
from jax.experimental import pallas as pl
from jax.experimental.pallas import tpu as pltpu

LANE = 128
SUBLANE = 8


def _round_up(n, m):
    return ((n + m - 1) // m) * m


def _pad2(a, rows, cols):
    r, c = a.shape
    return jnp.pad(a, ((0, rows - r), (0, cols - c)))


def _vmem_budget():
    """(vmem_limit_bytes, max edge tile) per chip generation.

    64-MiB-VMEM parts (v7x): 32 MiB scoped limit, te <= 256.
    128-MiB parts (v5e/v6e): 64 MiB scoped limit, te <= 512.
    """
    try:
        cap = pltpu.get_tpu_info().vmem_capacity_bytes
    except Exception:
        cap = 64 * 1024 * 1024
    if cap >= 100 * 1024 * 1024:
        return 64 * 1024 * 1024, 512
    return 32 * 1024 * 1024, 256


# ---------------------------------------------------------------------------
# Kernel 1: edge-parallel GINE message
#   msg = relu(x[src] + edge_attr @ We + be)      (x[src] gathered in wrapper)
# ---------------------------------------------------------------------------
def _message_kernel(xs_ref, ea_ref, we_ref, be_ref, msg_ref):
    e_emb = jnp.dot(ea_ref[...], we_ref[...],
                    preferred_element_type=jnp.float32) + be_ref[...]
    msg_ref[...] = jnp.maximum(xs_ref[...] + e_emb, 0.0)


def gine_messages(x_src, ea_pad, we, be, *, te, vmem_limit):
    e_pad, f_out = x_src.shape
    fe_pad = ea_pad.shape[1]
    ei_tiles = e_pad // te

    flops = 2 * e_pad * fe_pad * f_out + 2 * e_pad * f_out
    bytes_accessed = 4 * (2 * e_pad * f_out + e_pad * fe_pad
                          + fe_pad * f_out + f_out)

    return pl.pallas_call(
        _message_kernel,
        out_shape=jax.ShapeDtypeStruct((e_pad, f_out), jnp.float32),
        grid=(ei_tiles,),
        in_specs=[
            pl.BlockSpec((te, f_out), lambda i: (i, 0)),       # x[src] tile
            pl.BlockSpec((te, fe_pad), lambda i: (i, 0)),      # edge_attr tile
            pl.BlockSpec((fe_pad, f_out), lambda i: (0, 0)),   # We (resident)
            pl.BlockSpec((1, f_out), lambda i: (0, 0)),        # be
        ],
        out_specs=pl.BlockSpec((te, f_out), lambda i: (i, 0)),
        compiler_params=pltpu.CompilerParams(
            dimension_semantics=("parallel",),
            vmem_limit_bytes=vmem_limit),
        cost_estimate=pl.CostEstimate(flops=flops, transcendentals=0,
                                      bytes_accessed=bytes_accessed),
    )(x_src, ea_pad, we, be)


# ---------------------------------------------------------------------------
# Kernel 2: scatter-add + (1+eps) combine + 2-layer MLP + outer ReLU (conv1)
#   grid = (node_tiles, edge_tiles); edge axis innermost = accumulation axis.
#   The node-tile x block and all weights are DMA'd once per node tile / once
#   total (index_map constant over the inner axis).
# ---------------------------------------------------------------------------
def _scatter_mlp_kernel(eps_ref, x_ref, dst_ref, msg_ref,
                        w1_ref, b1_ref, w2_ref, b2_ref,
                        out_ref, acc_ref):
    ni = pl.program_id(0)
    ei = pl.program_id(1)

    @pl.when(ei == 0)
    def _init():
        acc_ref[...] = jnp.zeros_like(acc_ref)

    tn = acc_ref.shape[0]
    te = msg_ref.shape[0]

    # scatter-add of this edge tile's messages into this node tile, expressed
    # as an in-register (tn, te) one-hot fed to the MXU.  The shift is applied
    # to the small (1, te) dst vector instead of the full (tn, te) iota.
    # (0/1 mask is exact; cast both mask and msg to bf16 here for the v6e/v7x
    #  bf16 MXU path at ~1e-3 relative error if desired.)
    dst_local = dst_ref[...] - ni * tn                             # (1, te)
    row_iota = lax.broadcasted_iota(jnp.int32, (tn, te), 0)
    scatter = (row_iota == dst_local).astype(jnp.float32)          # (tn, te)
    acc_ref[...] += jnp.dot(scatter, msg_ref[...],
                            preferred_element_type=jnp.float32)

    @pl.when(ei == pl.num_programs(1) - 1)
    def _finalize():
        h0 = (1.0 + eps_ref[0, 0]) * x_ref[...] + acc_ref[...]
        h1 = jnp.maximum(jnp.dot(h0, w1_ref[...],
                                 preferred_element_type=jnp.float32)
                         + b1_ref[...], 0.0)
        h2 = jnp.dot(h1, w2_ref[...],
                     preferred_element_type=jnp.float32) + b2_ref[...]
        out_ref[...] = jnp.maximum(h2, 0.0)        # model's outer F.relu


def gine_scatter_mlp(x_pad, dst_row, msg, w1, b1, w2, b2, eps,
                     *, tn, te, vmem_limit):
    n_pad, f_pad = x_pad.shape
    e_pad = msg.shape[0]
    h_pad = w2.shape[1]
    ni_tiles, ei_tiles = n_pad // tn, e_pad // te
    eps_arr = jnp.full((1, 1), eps, jnp.float32)

    flops = (2 * n_pad * e_pad * f_pad                       # dense scatter
             + 2 * n_pad * (f_pad * h_pad + h_pad * h_pad))  # MLP
    bytes_accessed = 4 * (ni_tiles * e_pad * f_pad           # msg streamed / node tile
                          + n_pad * f_pad + n_pad * h_pad
                          + f_pad * h_pad + h_pad * h_pad + 2 * h_pad + e_pad)

    return pl.pallas_call(
        _scatter_mlp_kernel,
        out_shape=jax.ShapeDtypeStruct((n_pad, h_pad), jnp.float32),
        grid=(ni_tiles, ei_tiles),
        in_specs=[
            pl.BlockSpec(memory_space=pltpu.MemorySpace.SMEM),   # eps (scalar)
            pl.BlockSpec((tn, f_pad), lambda i, j: (i, 0)),      # x node tile
            pl.BlockSpec((1, te), lambda i, j: (0, j)),          # dst (lane-dense)
            pl.BlockSpec((te, f_pad), lambda i, j: (j, 0)),      # msg tile
            pl.BlockSpec((f_pad, h_pad), lambda i, j: (0, 0)),   # W1
            pl.BlockSpec((1, h_pad), lambda i, j: (0, 0)),       # b1
            pl.BlockSpec((h_pad, h_pad), lambda i, j: (0, 0)),   # W2
            pl.BlockSpec((1, h_pad), lambda i, j: (0, 0)),       # b2
        ],
        out_specs=pl.BlockSpec((tn, h_pad), lambda i, j: (i, 0)),
        scratch_shapes=[pltpu.VMEM((tn, f_pad), jnp.float32)],
        compiler_params=pltpu.CompilerParams(
            dimension_semantics=("parallel", "arbitrary"),
            vmem_limit_bytes=vmem_limit),
        cost_estimate=pl.CostEstimate(flops=flops, transcendentals=0,
                                      bytes_accessed=bytes_accessed),
    )(eps_arr, x_pad, dst_row, msg, w1, b1, w2, b2)


# ---------------------------------------------------------------------------
# Kernel 3: conv2 fused with global_add_pool + fc head.
#   Same scatter+MLP structure as kernel 2, but instead of writing node
#   embeddings to HBM it pools them into a (B_pad, H) VMEM accumulator and
#   applies the fc head on the very last grid step.  Node axis must be
#   sequential ("arbitrary") so the pooled scratch is valid on multi-TC chips.
# ---------------------------------------------------------------------------
def _scatter_mlp_pool_fc_kernel(eps_ref, x_ref, dst_ref, batch_ref, msg_ref,
                                w1_ref, b1_ref, w2_ref, b2_ref,
                                wf1_ref, bf1_ref, wf2_ref, bf2_ref,
                                out_ref, acc_ref, pooled_ref):
    ni = pl.program_id(0)
    ei = pl.program_id(1)
    last_n = pl.num_programs(0) - 1
    last_e = pl.num_programs(1) - 1

    @pl.when(jnp.logical_and(ni == 0, ei == 0))
    def _init_pool():
        pooled_ref[...] = jnp.zeros_like(pooled_ref)

    @pl.when(ei == 0)
    def _init_acc():
        acc_ref[...] = jnp.zeros_like(acc_ref)

    tn = acc_ref.shape[0]
    te = msg_ref.shape[0]
    b_pad = pooled_ref.shape[0]

    dst_local = dst_ref[...] - ni * tn
    row_iota = lax.broadcasted_iota(jnp.int32, (tn, te), 0)
    scatter = (row_iota == dst_local).astype(jnp.float32)
    acc_ref[...] += jnp.dot(scatter, msg_ref[...],
                            preferred_element_type=jnp.float32)

    @pl.when(ei == last_e)
    def _finalize_tile():
        h0 = (1.0 + eps_ref[0, 0]) * x_ref[...] + acc_ref[...]
        h1 = jnp.maximum(jnp.dot(h0, w1_ref[...],
                                 preferred_element_type=jnp.float32)
                         + b1_ref[...], 0.0)
        h2 = jnp.dot(h1, w2_ref[...],
                     preferred_element_type=jnp.float32) + b2_ref[...]
        h = jnp.maximum(h2, 0.0)                    # outer F.relu after conv2
        # fused global_add_pool: padded nodes carry graph id == b_pad sentinel,
        # so they never match the iota and never pollute the pooled sums.
        bids = batch_ref[...]                                      # (1, tn)
        g_iota = lax.broadcasted_iota(jnp.int32, (b_pad, tn), 0)
        pool = (g_iota == bids).astype(jnp.float32)                # (b_pad, tn)
        pooled_ref[...] += jnp.dot(pool, h, preferred_element_type=jnp.float32)

    @pl.when(jnp.logical_and(ni == last_n, ei == last_e))
    def _head():
        z1 = jnp.maximum(jnp.dot(pooled_ref[...], wf1_ref[...],
                                 preferred_element_type=jnp.float32)
                         + bf1_ref[...], 0.0)
        # TODO(synk): nn.Dropout in fc_block is identity at inference; no RNG applied.
        out_ref[...] = jnp.dot(z1, wf2_ref[...],
                               preferred_element_type=jnp.float32) + bf2_ref[...]


def gine_scatter_mlp_pool_fc(x_pad, dst_row, batch_row, msg,
                             w1, b1, w2, b2, wf1, bf1, wf2, bf2, eps,
                             *, tn, te, b_pad, vmem_limit):
    n_pad, h_pad = x_pad.shape
    e_pad = msg.shape[0]
    h2_pad = wf1.shape[1]
    o_pad = wf2.shape[1]
    ni_tiles, ei_tiles = n_pad // tn, e_pad // te
    eps_arr = jnp.full((1, 1), eps, jnp.float32)

    flops = (2 * n_pad * e_pad * h_pad                  # dense scatter
             + 4 * n_pad * h_pad * h_pad                # MLP2
             + 2 * b_pad * n_pad * h_pad                # pooling one-hot matmul
             + 2 * b_pad * (h_pad * h2_pad + h2_pad * o_pad))
    bytes_accessed = 4 * (ni_tiles * e_pad * h_pad + n_pad * h_pad
                          + 2 * h_pad * h_pad + h_pad * h2_pad + h2_pad * o_pad
                          + b_pad * o_pad + e_pad + n_pad)

    return pl.pallas_call(
        _scatter_mlp_pool_fc_kernel,
        out_shape=jax.ShapeDtypeStruct((b_pad, o_pad), jnp.float32),
        grid=(ni_tiles, ei_tiles),
        in_specs=[
            pl.BlockSpec(memory_space=pltpu.MemorySpace.SMEM),     # eps (scalar)
            pl.BlockSpec((tn, h_pad), lambda i, j: (i, 0)),        # h1 node tile
            pl.BlockSpec((1, te), lambda i, j: (0, j)),            # dst
            pl.BlockSpec((1, tn), lambda i, j: (0, i)),            # graph ids
            pl.BlockSpec((te, h_pad), lambda i, j: (j, 0)),        # msg tile
            pl.BlockSpec((h_pad, h_pad), lambda i, j: (0, 0)),     # W21
            pl.BlockSpec((1, h_pad), lambda i, j: (0, 0)),         # b21
            pl.BlockSpec((h_pad, h_pad), lambda i, j: (0, 0)),     # W22
            pl.BlockSpec((1, h_pad), lambda i, j: (0, 0)),         # b22
            pl.BlockSpec((h_pad, h2_pad), lambda i, j: (0, 0)),    # Wf1
            pl.BlockSpec((1, h2_pad), lambda i, j: (0, 0)),        # bf1
            pl.BlockSpec((h2_pad, o_pad), lambda i, j: (0, 0)),    # Wf2
            pl.BlockSpec((1, o_pad), lambda i, j: (0, 0)),         # bf2
        ],
        out_specs=pl.BlockSpec((b_pad, o_pad), lambda i, j: (0, 0)),
        scratch_shapes=[pltpu.VMEM((tn, h_pad), jnp.float32),
                        pltpu.VMEM((b_pad, h_pad), jnp.float32)],
        compiler_params=pltpu.CompilerParams(
            dimension_semantics=("arbitrary", "arbitrary"),
            vmem_limit_bytes=vmem_limit),
        cost_estimate=pl.CostEstimate(flops=flops, transcendentals=0,
                                      bytes_accessed=bytes_accessed),
    )(eps_arr, x_pad, dst_row, batch_row, msg,
      w1, b1, w2, b2, wf1, bf1, wf2, bf2)


# ---------------------------------------------------------------------------
# Full model forward (padding / gather plumbing in JAX, all matmuls in Pallas)
# ---------------------------------------------------------------------------
def gine_forward(params, x, edge_index, edge_attr, batch, num_graphs):
    n, f_in = x.shape
    e, fe = edge_attr.shape
    hidden = params["w12"].shape[1]
    out_dim = params["wf2"].shape[1]

    vmem_limit, te_max = _vmem_budget()

    # padded sizes: lane-dense feature dims, sublane/lane aligned row tiles
    f_pad = _round_up(f_in, LANE)
    fe_pad = _round_up(fe, LANE)
    h_pad = _round_up(hidden, LANE)
    h2_pad = _round_up(2 * hidden, LANE)
    o_pad = _round_up(out_dim, LANE)
    b_pad = _round_up(num_graphs, SUBLANE)

    tn = min(256, _round_up(n, SUBLANE))        # node tile (sublane-aligned)
    n_pad = _round_up(n, tn)
    te = min(te_max, _round_up(e, LANE))        # edge tile (lane-aligned)
    e_pad = _round_up(e, te)

    # padded node / edge tensors
    x_p = _pad2(x.astype(jnp.float32), n_pad, f_pad)
    ea_p = _pad2(edge_attr.astype(jnp.float32), e_pad, fe_pad)
    src = edge_index[0].astype(jnp.int32)
    dst = edge_index[1].astype(jnp.int32)
    pad_e = e_pad - e
    # padded edges: src=0 (gathers a real row, harmless) but dst = n_pad
    # sentinel (never matches a node-tile row id -> never scattered).
    src_pad = jnp.concatenate([src, jnp.zeros((pad_e,), jnp.int32)])
    dst_row = jnp.concatenate(
        [dst, jnp.full((pad_e,), n_pad, jnp.int32)])[None, :]       # [1, E_pad]
    # padded nodes: graph id = b_pad sentinel (never pooled).
    batch_row = jnp.concatenate(
        [batch.astype(jnp.int32),
         jnp.full((n_pad - n,), b_pad, jnp.int32)])[None, :]        # [1, N_pad]

    # zero-padded weights (padded rows/cols are exact zeros -> no leakage)
    we1 = _pad2(params["we1"], fe_pad, f_pad); be1 = _pad2(params["be1"], 1, f_pad)
    w11 = _pad2(params["w11"], f_pad, h_pad);  b11 = _pad2(params["b11"], 1, h_pad)
    w12 = _pad2(params["w12"], h_pad, h_pad);  b12 = _pad2(params["b12"], 1, h_pad)
    we2 = _pad2(params["we2"], fe_pad, h_pad); be2 = _pad2(params["be2"], 1, h_pad)
    w21 = _pad2(params["w21"], h_pad, h_pad);  b21 = _pad2(params["b21"], 1, h_pad)
    w22 = _pad2(params["w22"], h_pad, h_pad);  b22 = _pad2(params["b22"], 1, h_pad)
    wf1 = _pad2(params["wf1"], h_pad, h2_pad); bf1 = _pad2(params["bf1"], 1, h2_pad)
    wf2 = _pad2(params["wf2"], h2_pad, o_pad); bf2 = _pad2(params["bf2"], 1, o_pad)

    # ---- layer 1 -----------------------------------------------------------
    # O(E) source-row gather via XLA's native gather (no one-hot matmul).
    # TODO(synk): could move in-kernel via a scalar-prefetch DMA row gather.
    x_src = x_p[src_pad]                                             # [E_pad, F]
    msg1 = gine_messages(x_src, ea_p, we1, be1, te=te, vmem_limit=vmem_limit)
    h1 = gine_scatter_mlp(x_p, dst_row, msg1, w11, b11, w12, b12,
                          params["eps1"], tn=tn, te=te, vmem_limit=vmem_limit)
    # dropout after conv1 is identity at inference.

    # ---- layer 2 + global_add_pool + fc head (fused) ------------------------
    h1_src = h1[src_pad]                                             # [E_pad, H]
    msg2 = gine_messages(h1_src, ea_p, we2, be2, te=te, vmem_limit=vmem_limit)
    out = gine_scatter_mlp_pool_fc(h1, dst_row, batch_row, msg2,
                                   w21, b21, w22, b22, wf1, bf1, wf2, bf2,
                                   params["eps2"], tn=tn, te=te, b_pad=b_pad,
                                   vmem_limit=vmem_limit)
    return out[:num_graphs, :out_dim]


# Pure-JAX reference (same math, no Pallas) for a sanity check.
def gine_forward_ref(params, x, edge_index, edge_attr, batch, num_graphs):
    src, dst = edge_index[0], edge_index[1]

    def conv(x_in, we, be, w1, b1, w2, b2, eps):
        msg = jax.nn.relu(x_in[src] + edge_attr @ we + be)
        agg = jnp.zeros_like(x_in).at[dst].add(msg)
        h0 = (1.0 + eps) * x_in + agg
        return jax.nn.relu(jax.nn.relu(h0 @ w1 + b1) @ w2 + b2)

    h = conv(x, params["we1"], params["be1"], params["w11"], params["b11"],
             params["w12"], params["b12"], params["eps1"])
    h = conv(h, params["we2"], params["be2"], params["w21"], params["b21"],
             params["w22"], params["b22"], params["eps2"])
    pooled = jnp.zeros((num_graphs, h.shape[1]), jnp.float32).at[batch].add(h)
    z1 = jax.nn.relu(pooled @ params["wf1"] + params["bf1"])
    return z1 @ params["wf2"] + params["bf2"]


def init_params(key, node_features, edge_features, hidden_dim, output_dim):
    ks = jax.random.split(key, 8)

    def w(k, i, o):
        return jax.random.normal(k, (i, o), jnp.float32) * 0.1

    return {
        # conv1: lin_edge (edge_features -> node_features) + MLP1
        "we1": w(ks[0], edge_features, node_features),
        "be1": jnp.zeros((1, node_features), jnp.float32),
        "w11": w(ks[1], node_features, hidden_dim),
        "b11": jnp.zeros((1, hidden_dim), jnp.float32),
        "w12": w(ks[2], hidden_dim, hidden_dim),
        "b12": jnp.zeros((1, hidden_dim), jnp.float32),
        "eps1": jnp.float32(0.0),   # train_eps=True initializes eps to 0
        # conv2: lin_edge (edge_features -> hidden_dim) + MLP2
        "we2": w(ks[3], edge_features, hidden_dim),
        "be2": jnp.zeros((1, hidden_dim), jnp.float32),
        "w21": w(ks[4], hidden_dim, hidden_dim),
        "b21": jnp.zeros((1, hidden_dim), jnp.float32),
        "w22": w(ks[5], hidden_dim, hidden_dim),
        "b22": jnp.zeros((1, hidden_dim), jnp.float32),
        "eps2": jnp.float32(0.0),
        # fc_block
        "wf1": w(ks[6], hidden_dim, hidden_dim * 2),
        "bf1": jnp.zeros((1, hidden_dim * 2), jnp.float32),
        "wf2": w(ks[7], hidden_dim * 2, output_dim),
        "bf2": jnp.zeros((1, output_dim), jnp.float32),
    }


if __name__ == "__main__":
    node_features, edge_features = 8, 4
    hidden_dim, output_dim = 32, 3
    n_nodes, n_edges, n_graphs = 16, 32, 2

    key = jax.random.PRNGKey(0)
    k_x, k_e, k_src, k_dst, k_p = jax.random.split(key, 5)

    x = jax.random.normal(k_x, (n_nodes, node_features), jnp.float32)
    edge_attr = jax.random.normal(k_e, (n_edges, edge_features), jnp.float32)
    # nodes 0..7 -> graph 0, nodes 8..15 -> graph 1; edges stay within a graph
    batch = jnp.concatenate([jnp.zeros(8, jnp.int32), jnp.ones(8, jnp.int32)])
    src0 = jax.random.randint(k_src, (n_edges // 2,), 0, 8)
    dst0 = jax.random.randint(k_dst, (n_edges // 2,), 0, 8)
    src = jnp.concatenate([src0, src0 + 8])
    dst = jnp.concatenate([dst0, dst0 + 8])
    edge_index = jnp.stack([src, dst]).astype(jnp.int32)

    params = init_params(k_p, node_features, edge_features, hidden_dim, output_dim)

    fwd = jax.jit(gine_forward, static_argnames=("num_graphs",))
    out = fwd(params, x, edge_index, edge_attr, batch, num_graphs=n_graphs)
    out = jax.block_until_ready(out)

    ref = gine_forward_ref(params, x, edge_index, edge_attr, batch, n_graphs)
    assert out.shape == (n_graphs, output_dim)
    assert jnp.allclose(out, ref, atol=1e-4, rtol=1e-4), (out, ref)
    print("KERNEL_OK")
</pallas_src>

<mosaic_0001>
module attributes {stable_mosaic.version = 11 : i64} {
  func.func @_message_kernel(%arg0: i32, %arg1: memref<128x128xf32, #tpu.memory_space<vmem>>, %arg2: memref<128x128xf32, #tpu.memory_space<vmem>>, %arg3: memref<128x128xf32, #tpu.memory_space<vmem>>, %arg4: memref<1x128xf32, #tpu.memory_space<vmem>>, %arg5: memref<128x128xf32, #tpu.memory_space<vmem>>) attributes {dimension_semantics = [#tpu.dimension_semantics<parallel>], iteration_bounds = array<i64: 1>, scalar_prefetch = 0 : i64, scratch_operands = 0 : i64, tpu.core_type = #tpu.core_type<tc>, window_params = [{transform_indices = @transform_0, window_bounds = array<i64: 128, 128>}, {transform_indices = @transform_1, window_bounds = array<i64: 128, 128>}, {pipeline_mode = #tpu.pipeline_mode<synchronous>, transform_indices = @transform_2, window_bounds = array<i64: 128, 128>}, {pipeline_mode = #tpu.pipeline_mode<synchronous>, transform_indices = @transform_3, window_bounds = array<i64: 1, 128>}, {transform_indices = @transform_4, window_bounds = array<i64: 128, 128>}]} {
    %c0 = arith.constant 0 : index
    %c0_0 = arith.constant 0 : index
    %0 = vector.load %arg2[%c0, %c0_0] : memref<128x128xf32, #tpu.memory_space<vmem>>, vector<128x128xf32>
    %c0_1 = arith.constant 0 : index
    %c0_2 = arith.constant 0 : index
    %1 = vector.load %arg3[%c0_1, %c0_2] : memref<128x128xf32, #tpu.memory_space<vmem>>, vector<128x128xf32>
    %cst = arith.constant dense<0.000000e+00> : vector<128x128xf32>
    %2 = tpu.matmul %0, %1, %cst {dimension_numbers = #tpu.dot_dimension_numbers<[1], [0], [0], [1], [0, 0, 1, 1], [], []>} : vector<128x128xf32>, vector<128x128xf32>, vector<128x128xf32> -> vector<128x128xf32>
    %c0_3 = arith.constant 0 : index
    %c0_4 = arith.constant 0 : index
    %3 = vector.load %arg4[%c0_3, %c0_4] : memref<1x128xf32, #tpu.memory_space<vmem>>, vector<1x128xf32>
    %4 = vector.broadcast %3 : vector<1x128xf32> to vector<128x128xf32>
    %5 = arith.addf %2, %4 : vector<128x128xf32>
    %c0_5 = arith.constant 0 : index
    %c0_6 = arith.constant 0 : index
    %6 = vector.load %arg1[%c0_5, %c0_6] : memref<128x128xf32, #tpu.memory_space<vmem>>, vector<128x128xf32>
    %7 = arith.addf %6, %5 : vector<128x128xf32>
    %cst_7 = arith.constant 0.000000e+00 : f32
    %8 = vector.broadcast %cst_7 : f32 to vector<128x128xf32>
    %9 = arith.maximumf %7, %8 : vector<128x128xf32>
    %c0_8 = arith.constant 0 : index
    %c0_9 = arith.constant 0 : index
    %10 = vector.load %arg5[%c0_8, %c0_9] : memref<128x128xf32, #tpu.memory_space<vmem>>, vector<128x128xf32>
    tpu.vector_store %arg5[%c0_8, %c0_9], %9 {strides = array<i32>} : memref<128x128xf32, #tpu.memory_space<vmem>>, vector<128x128xf32>,
    return
  }
  func.func @transform_0(%arg0: i32) -> (i32, i32) {
    %c0_i32 = arith.constant 0 : i32
    %c0_i32_0 = arith.constant 0 : i32
    return %arg0, %c0_i32 : i32, i32
  }
  func.func @transform_1(%arg0: i32) -> (i32, i32) {
    %c0_i32 = arith.constant 0 : i32
    %c0_i32_0 = arith.constant 0 : i32
    return %arg0, %c0_i32 : i32, i32
  }
  func.func @transform_2(%arg0: i32) -> (i32, i32) {
    %c0_i32 = arith.constant 0 : i32
    %c0_i32_0 = arith.constant 0 : i32
    %c0_i32_1 = arith.constant 0 : i32
    return %c0_i32, %c0_i32_0 : i32, i32
  }
  func.func @transform_3(%arg0: i32) -> (i32, i32) {
    %c0_i32 = arith.constant 0 : i32
    %c0_i32_0 = arith.constant 0 : i32
    %c0_i32_1 = arith.constant 0 : i32
    return %c0_i32, %c0_i32_0 : i32, i32
  }
  func.func @transform_4(%arg0: i32) -> (i32, i32) {
    %c0_i32 = arith.constant 0 : i32
    %c0_i32_0 = arith.constant 0 : i32
    return %arg0, %c0_i32 : i32, i32
  }
}

module attributes {stable_mosaic.version = 11 : i64} {
  func.func @_scatter_mlp_kernel(%arg0: i32, %arg1: i32, %arg2: memref<1x1xf32, #tpu.memory_space<smem>>, %arg3: memref<16x128xf32, #tpu.memory_space<vmem>>, %arg4: memref<1x128xi32, #tpu.memory_space<vmem>>, %arg5: memref<128x128xf32, #tpu.memory_space<vmem>>, %arg6: memref<128x128xf32, #tpu.memory_space<vmem>>, %arg7: memref<1x128xf32, #tpu.memory_space<vmem>>, %arg8: memref<128x128xf32, #tpu.memory_space<vmem>>, %arg9: memref<1x128xf32, #tpu.memory_space<vmem>>, %arg10: memref<16x128xf32, #tpu.memory_space<vmem>>, %arg11: memref<16x128xf32, #tpu.memory_space<vmem>>) attributes {dimension_semantics = [#tpu.dimension_semantics<parallel>, #tpu.dimension_semantics<arbitrary>], iteration_bounds = array<i64: 1, 1>, scalar_prefetch = 0 : i64, scratch_operands = 1 : i64, tpu.core_type = #tpu.core_type<tc>, window_params = [{transform_indices = @transform_0, window_bounds = array<i64: 1, 1>}, {transform_indices = @transform_1, window_bounds = array<i64: 16, 128>}, {transform_indices = @transform_2, window_bounds = array<i64: 1, 128>}, {transform_indices = @transform_3, window_bounds = array<i64: 128, 128>}, {pipeline_mode = #tpu.pipeline_mode<synchronous>, transform_indices = @transform_4, window_bounds = array<i64: 128, 128>}, {pipeline_mode = #tpu.pipeline_mode<synchronous>, transform_indices = @transform_5, window_bounds = array<i64: 1, 128>}, {pipeline_mode = #tpu.pipeline_mode<synchronous>, transform_indices = @transform_6, window_bounds = array<i64: 128, 128>}, {pipeline_mode = #tpu.pipeline_mode<synchronous>, transform_indices = @transform_7, window_bounds = array<i64: 1, 128>}, {transform_indices = @transform_8, window_bounds = array<i64: 16, 128>}]} {
    %c0_i32 = arith.constant 0 : i32
    %0 = arith.cmpi eq, %arg1, %c0_i32 : i32
    %1 = arith.extui %0 : i1 to i32
    %c0_i32_0 = arith.constant 0 : i32
    %2 = arith.cmpi ne, %1, %c0_i32_0 : i32
    scf.if %2 {
      %cst_10 = arith.constant 0.000000e+00 : f32
      %20 = vector.broadcast %cst_10 : f32 to vector<16x128xf32>
      %c0_11 = arith.constant 0 : index
      %c0_12 = arith.constant 0 : index
      %21 = vector.load %arg11[%c0_11, %c0_12] : memref<16x128xf32, #tpu.memory_space<vmem>>, vector<16x128xf32>
      tpu.vector_store %arg11[%c0_11, %c0_12], %20 {strides = array<i32>} : memref<16x128xf32, #tpu.memory_space<vmem>>, vector<16x128xf32>,
    } else {
    }
    %c0 = arith.constant 0 : index
    %c0_1 = arith.constant 0 : index
    %3 = vector.load %arg4[%c0, %c0_1] : memref<1x128xi32, #tpu.memory_space<vmem>>, vector<1x128xi32>
    %c16_i32 = arith.constant 16 : i32
    %4 = arith.muli %arg0, %c16_i32 : i32
    %5 = vector.broadcast %4 : i32 to vector<1x128xi32>
    %6 = arith.subi %3, %5 : vector<1x128xi32>
    %7 = tpu.iota {dimensions = array<i32: 0>} : vector<16x128xi32>
    %8 = vector.broadcast %6 : vector<1x128xi32> to vector<16x128xi32>
    %9 = arith.cmpi eq, %7, %8 : vector<16x128xi32>
    %10 = arith.extui %9 : vector<16x128xi1> to vector<16x128xi32>
    %11 = arith.sitofp %10 : vector<16x128xi32> to vector<16x128xf32>
    %c0_2 = arith.constant 0 : index
    %c0_3 = arith.constant 0 : index
    %12 = vector.load %arg11[%c0_2, %c0_3] : memref<16x128xf32, #tpu.memory_space<vmem>>, vector<16x128xf32>
    %c0_4 = arith.constant 0 : index
    %c0_5 = arith.constant 0 : index
    %13 = vector.load %arg5[%c0_4, %c0_5] : memref<128x128xf32, #tpu.memory_space<vmem>>, vector<128x128xf32>
    %cst = arith.constant dense<0.000000e+00> : vector<16x128xf32>
    %14 = tpu.matmul %11, %13, %cst {dimension_numbers = #tpu.dot_dimension_numbers<[1], [0], [0], [1], [0, 0, 1, 1], [], []>} : vector<16x128xf32>, vector<128x128xf32>, vector<16x128xf32> -> vector<16x128xf32>
    %15 = arith.addf %12, %14 : vector<16x128xf32>
    %c0_6 = arith.constant 0 : index
    %c0_7 = arith.constant 0 : index
    %16 = vector.load %arg11[%c0_6, %c0_7] : memref<16x128xf32, #tpu.memory_space<vmem>>, vector<16x128xf32>
    tpu.vector_store %arg11[%c0_6, %c0_7], %15 {strides = array<i32>} : memref<16x128xf32, #tpu.memory_space<vmem>>, vector<16x128xf32>,
    %c0_i32_8 = arith.constant 0 : i32
    %17 = arith.cmpi eq, %arg1, %c0_i32_8 : i32
    %18 = arith.extui %17 : i1 to i32
    %c0_i32_9 = arith.constant 0 : i32
    %19 = arith.cmpi ne, %18, %c0_i32_9 : i32
    scf.if %19 {
      %c0_10 = arith.constant 0 : index
      %c0_11 = arith.constant 0 : index
      %20 = memref.load %arg2[%c0_10, %c0_11] : memref<1x1xf32, #tpu.memory_space<smem>>
      %cst_12 = arith.constant 1.000000e+00 : f32
      %21 = arith.addf %cst_12, %20 : f32
      %c0_13 = arith.constant 0 : index
      %c0_14 = arith.constant 0 : index
      %22 = vector.load %arg3[%c0_13, %c0_14] : memref<16x128xf32, #tpu.memory_space<vmem>>, vector<16x128xf32>
      %23 = vector.broadcast %21 : f32 to vector<16x128xf32>
      %24 = arith.mulf %23, %22 : vector<16x128xf32>
      %c0_15 = arith.constant 0 : index
      %c0_16 = arith.constant 0 : index
      %25 = vector.load %arg11[%c0_15, %c0_16] : memref<16x128xf32, #tpu.memory_space<vmem>>, vector<16x128xf32>
      %26 = arith.addf %24, %25 : vector<16x128xf32>
      %c0_17 = arith.constant 0 : index
      %c0_18 = arith.constant 0 : index
      %27 = vector.load %arg6[%c0_17, %c0_18] : memref<128x128xf32, #tpu.memory_space<vmem>>, vector<128x128xf32>
      %cst_19 = arith.constant dense<0.000000e+00> : vector<16x128xf32>
      %28 = tpu.matmul %26, %27, %cst_19 {dimension_numbers = #tpu.dot_dimension_numbers<[1], [0], [0], [1], [0, 0, 1, 1], [], []>} : vector<16x128xf32>, vector<128x128xf32>, vector<16x128xf32> -> vector<16x128xf32>
      %c0_20 = arith.constant 0 : index
      %c0_21 = arith.constant 0 : index
      %29 = vector.load %arg7[%c0_20, %c0_21] : memref<1x128xf32, #tpu.memory_space<vmem>>, vector<1x128xf32>
      %30 = vector.broadcast %29 : vector<1x128xf32> to vector<16x128xf32>
      %31 = arith.addf %28, %30 : vector<16x128xf32>
      %cst_22 = arith.constant 0.000000e+00 : f32
      %32 = vector.broadcast %cst_22 : f32 to vector<16x128xf32>
      %33 = arith.maximumf %31, %32 : vector<16x128xf32>
      %c0_23 = arith.constant 0 : index
      %c0_24 = arith.constant 0 : index
      %34 = vector.load %arg8[%c0_23, %c0_24] : memref<128x128xf32, #tpu.memory_space<vmem>>, vector<128x128xf32>
      %cst_25 = arith.constant dense<0.000000e+00> : vector<16x128xf32>
      %35 = tpu.matmul %33, %34, %cst_25 {dimension_numbers = #tpu.dot_dimension_numbers<[1], [0], [0], [1], [0, 0, 1, 1], [], []>} : vector<16x128xf32>, vector<128x128xf32>, vector<16x128xf32> -> vector<16x128xf32>
      %c0_26 = arith.constant 0 : index
      %c0_27 = arith.constant 0 : index
      %36 = vector.load %arg9[%c0_26, %c0_27] : memref<1x128xf32, #tpu.memory_space<vmem>>, vector<1x128xf32>
      %37 = vector.broadcast %36 : vector<1x128xf32> to vector<16x128xf32>
      %38 = arith.addf %35, %37 : vector<16x128xf32>
      %cst_28 = arith.constant 0.000000e+00 : f32
      %39 = vector.broadcast %cst_28 : f32 to vector<16x128xf32>
      %40 = arith.maximumf %38, %39 : vector<16x128xf32>
      %c0_29 = arith.constant 0 : index
      %c0_30 = arith.constant 0 : index
      %41 = vector.load %arg10[%c0_29, %c0_30] : memref<16x128xf32, #tpu.memory_space<vmem>>, vector<16x128xf32>
      tpu.vector_store %arg10[%c0_29, %c0_30], %40 {strides = array<i32>} : memref<16x128xf32, #tpu.memory_space<vmem>>, vector<16x128xf32>,
    } else {
    }
    return
  }
  func.func @transform_0(%arg0: i32, %arg1: i32) -> (i32, i32) {
    %c0_i32 = arith.constant 0 : i32
    %c0_i32_0 = arith.constant 0 : i32
    %c0_i32_1 = arith.constant 0 : i32
    return %c0_i32, %c0_i32_0 : i32, i32
  }
  func.func @transform_1(%arg0: i32, %arg1: i32) -> (i32, i32) {
    %c0_i32 = arith.constant 0 : i32
    %c0_i32_0 = arith.constant 0 : i32
    return %arg0, %c0_i32 : i32, i32
  }
  func.func @transform_2(%arg0: i32, %arg1: i32) -> (i32, i32) {
    %c0_i32 = arith.constant 0 : i32
    %c0_i32_0 = arith.constant 0 : i32
    return %c0_i32, %arg1 : i32, i32
  }
  func.func @transform_3(%arg0: i32, %arg1: i32) -> (i32, i32) {
    %c0_i32 = arith.constant 0 : i32
    %c0_i32_0 = arith.constant 0 : i32
    return %arg1, %c0_i32 : i32, i32
  }
  func.func @transform_4(%arg0: i32, %arg1: i32) -> (i32, i32) {
    %c0_i32 = arith.constant 0 : i32
    %c0_i32_0 = arith.constant 0 : i32
    %c0_i32_1 = arith.constant 0 : i32
    return %c0_i32, %c0_i32_0 : i32, i32
  }
  func.func @transform_5(%arg0: i32, %arg1: i32) -> (i32, i32) {
    %c0_i32 = arith.constant 0 : i32
    %c0_i32_0 = arith.constant 0 : i32
    %c0_i32_1 = arith.constant 0 : i32
    return %c0_i32, %c0_i32_0 : i32, i32
  }
  func.func @transform_6(%arg0: i32, %arg1: i32) -> (i32, i32) {
    %c0_i32 = arith.constant 0 : i32
    %c0_i32_0 = arith.constant 0 : i32
    %c0_i32_1 = arith.constant 0 : i32
    return %c0_i32, %c0_i32_0 : i32, i32
  }
  func.func @transform_7(%arg0: i32, %arg1: i32) -> (i32, i32) {
    %c0_i32 = arith.constant 0 : i32
    %c0_i32_0 = arith.constant 0 : i32
    %c0_i32_1 = arith.constant 0 : i32
    return %c0_i32, %c0_i32_0 : i32, i32
  }
  func.func @transform_8(%arg0: i32, %arg1: i32) -> (i32, i32) {
    %c0_i32 = arith.constant 0 : i32
    %c0_i32_0 = arith.constant 0 : i32
    return %arg0, %c0_i32 : i32, i32
  }
}

module attributes {stable_mosaic.version = 11 : i64} {
  func.func @_scatter_mlp_pool_fc_kernel(%arg0: i32, %arg1: i32, %arg2: memref<1x1xf32, #tpu.memory_space<smem>>, %arg3: memref<16x128xf32, #tpu.memory_space<vmem>>, %arg4: memref<1x128xi32, #tpu.memory_space<vmem>>, %arg5: memref<1x16xi32, #tpu.memory_space<vmem>>, %arg6: memref<128x128xf32, #tpu.memory_space<vmem>>, %arg7: memref<128x128xf32, #tpu.memory_space<vmem>>, %arg8: memref<1x128xf32, #tpu.memory_space<vmem>>, %arg9: memref<128x128xf32, #tpu.memory_space<vmem>>, %arg10: memref<1x128xf32, #tpu.memory_space<vmem>>, %arg11: memref<128x128xf32, #tpu.memory_space<vmem>>, %arg12: memref<1x128xf32, #tpu.memory_space<vmem>>, %arg13: memref<128x128xf32, #tpu.memory_space<vmem>>, %arg14: memref<1x128xf32, #tpu.memory_space<vmem>>, %arg15: memref<8x128xf32, #tpu.memory_space<vmem>>, %arg16: memref<16x128xf32, #tpu.memory_space<vmem>>, %arg17: memref<8x128xf32, #tpu.memory_space<vmem>>) attributes {dimension_semantics = [#tpu.dimension_semantics<arbitrary>, #tpu.dimension_semantics<arbitrary>], iteration_bounds = array<i64: 1, 1>, scalar_prefetch = 0 : i64, scratch_operands = 2 : i64, tpu.core_type = #tpu.core_type<tc>, window_params = [{transform_indices = @transform_0, window_bounds = array<i64: 1, 1>}, {transform_indices = @transform_1, window_bounds = array<i64: 16, 128>}, {transform_indices = @transform_2, window_bounds = array<i64: 1, 128>}, {transform_indices = @transform_3, window_bounds = array<i64: 1, 16>}, {transform_indices = @transform_4, window_bounds = array<i64: 128, 128>}, {pipeline_mode = #tpu.pipeline_mode<synchronous>, transform_indices = @transform_5, window_bounds = array<i64: 128, 128>}, {pipeline_mode = #tpu.pipeline_mode<synchronous>, transform_indices = @transform_6, window_bounds = array<i64: 1, 128>}, {pipeline_mode = #tpu.pipeline_mode<synchronous>, transform_indices = @transform_7, window_bounds = array<i64: 128, 128>}, {pipeline_mode = #tpu.pipeline_mode<synchronous>, transform_indices = @transform_8, window_bounds = array<i64: 1, 128>}, {pipeline_mode = #tpu.pipeline_mode<synchronous>, transform_indices = @transform_9, window_bounds = array<i64: 128, 128>}, {pipeline_mode = #tpu.pipeline_mode<synchronous>, transform_indices = @transform_10, window_bounds = array<i64: 1, 128>}, {pipeline_mode = #tpu.pipeline_mode<synchronous>, transform_indices = @transform_11, window_bounds = array<i64: 128, 128>}, {pipeline_mode = #tpu.pipeline_mode<synchronous>, transform_indices = @transform_12, window_bounds = array<i64: 1, 128>}, {pipeline_mode = #tpu.pipeline_mode<synchronous>, transform_indices = @transform_13, window_bounds = array<i64: 8, 128>}]} {
    %c0_i32 = arith.constant 0 : i32
    %0 = arith.cmpi eq, %arg0, %c0_i32 : i32
    %c0_i32_0 = arith.constant 0 : i32
    %1 = arith.cmpi eq, %arg1, %c0_i32_0 : i32
    %2 = arith.andi %0, %1 : i1
    %3 = arith.extui %2 : i1 to i32
    %c0_i32_1 = arith.constant 0 : i32
    %4 = arith.cmpi ne, %3, %c0_i32_1 : i32
    scf.if %4 {
      %cst_16 = arith.constant 0.000000e+00 : f32
      %30 = vector.broadcast %cst_16 : f32 to vector<8x128xf32>
      %c0_17 = arith.constant 0 : index
      %c0_18 = arith.constant 0 : index
      %31 = vector.load %arg17[%c0_17, %c0_18] : memref<8x128xf32, #tpu.memory_space<vmem>>, vector<8x128xf32>
      tpu.vector_store %arg17[%c0_17, %c0_18], %30 {strides = array<i32>} : memref<8x128xf32, #tpu.memory_space<vmem>>, vector<8x128xf32>,
    } else {
    }
    %c0_i32_2 = arith.constant 0 : i32
    %5 = arith.cmpi eq, %arg1, %c0_i32_2 : i32
    %6 = arith.extui %5 : i1 to i32
    %c0_i32_3 = arith.constant 0 : i32
    %7 = arith.cmpi ne, %6, %c0_i32_3 : i32
    scf.if %7 {
      %cst_16 = arith.constant 0.000000e+00 : f32
      %30 = vector.broadcast %cst_16 : f32 to vector<16x128xf32>
      %c0_17 = arith.constant 0 : index
      %c0_18 = arith.constant 0 : index
      %31 = vector.load %arg16[%c0_17, %c0_18] : memref<16x128xf32, #tpu.memory_space<vmem>>, vector<16x128xf32>
      tpu.vector_store %arg16[%c0_17, %c0_18], %30 {strides = array<i32>} : memref<16x128xf32, #tpu.memory_space<vmem>>, vector<16x128xf32>,
    } else {
    }
    %c0 = arith.constant 0 : index
    %c0_4 = arith.constant 0 : index
    %8 = vector.load %arg4[%c0, %c0_4] : memref<1x128xi32, #tpu.memory_space<vmem>>, vector<1x128xi32>
    %c16_i32 = arith.constant 16 : i32
    %9 = arith.muli %arg0, %c16_i32 : i32
    %10 = vector.broadcast %9 : i32 to vector<1x128xi32>
    %11 = arith.subi %8, %10 : vector<1x128xi32>
    %12 = tpu.iota {dimensions = array<i32: 0>} : vector<16x128xi32>
    %13 = vector.broadcast %11 : vector<1x128xi32> to vector<16x128xi32>
    %14 = arith.cmpi eq, %12, %13 : vector<16x128xi32>
    %15 = arith.extui %14 : vector<16x128xi1> to vector<16x128xi32>
    %16 = arith.sitofp %15 : vector<16x128xi32> to vector<16x128xf32>
    %c0_5 = arith.constant 0 : index
    %c0_6 = arith.constant 0 : index
    %17 = vector.load %arg16[%c0_5, %c0_6] : memref<16x128xf32, #tpu.memory_space<vmem>>, vector<16x128xf32>
    %c0_7 = arith.constant 0 : index
    %c0_8 = arith.constant 0 : index
    %18 = vector.load %arg6[%c0_7, %c0_8] : memref<128x128xf32, #tpu.memory_space<vmem>>, vector<128x128xf32>
    %cst = arith.constant dense<0.000000e+00> : vector<16x128xf32>
    %19 = tpu.matmul %16, %18, %cst {dimension_numbers = #tpu.dot_dimension_numbers<[1], [0], [0], [1], [0, 0, 1, 1], [], []>} : vector<16x128xf32>, vector<128x128xf32>, vector<16x128xf32> -> vector<16x128xf32>
    %20 = arith.addf %17, %19 : vector<16x128xf32>
    %c0_9 = arith.constant 0 : index
    %c0_10 = arith.constant 0 : index
    %21 = vector.load %arg16[%c0_9, %c0_10] : memref<16x128xf32, #tpu.memory_space<vmem>>, vector<16x128xf32>
    tpu.vector_store %arg16[%c0_9, %c0_10], %20 {strides = array<i32>} : memref<16x128xf32, #tpu.memory_space<vmem>>, vector<16x128xf32>,
    %c0_i32_11 = arith.constant 0 : i32
    %22 = arith.cmpi eq, %arg1, %c0_i32_11 : i32
    %23 = arith.extui %22 : i1 to i32
    %c0_i32_12 = arith.constant 0 : i32
    %24 = arith.cmpi ne, %23, %c0_i32_12 : i32
    scf.if %24 {
      %c0_16 = arith.constant 0 : index
      %c0_17 = arith.constant 0 : index
      %30 = memref.load %arg2[%c0_16, %c0_17] : memref<1x1xf32, #tpu.memory_space<smem>>
      %cst_18 = arith.constant 1.000000e+00 : f32
      %31 = arith.addf %cst_18, %30 : f32
      %c0_19 = arith.constant 0 : index
      %c0_20 = arith.constant 0 : index
      %32 = vector.load %arg3[%c0_19, %c0_20] : memref<16x128xf32, #tpu.memory_space<vmem>>, vector<16x128xf32>
      %33 = vector.broadcast %31 : f32 to vector<16x128xf32>
      %34 = arith.mulf %33, %32 : vector<16x128xf32>
      %c0_21 = arith.constant 0 : index
      %c0_22 = arith.constant 0 : index
      %35 = vector.load %arg16[%c0_21, %c0_22] : memref<16x128xf32, #tpu.memory_space<vmem>>, vector<16x128xf32>
      %36 = arith.addf %34, %35 : vector<16x128xf32>
      %c0_23 = arith.constant 0 : index
      %c0_24 = arith.constant 0 : index
      %37 = vector.load %arg7[%c0_23, %c0_24] : memref<128x128xf32, #tpu.memory_space<vmem>>, vector<128x128xf32>
      %cst_25 = arith.constant dense<0.000000e+00> : vector<16x128xf32>
      %38 = tpu.matmul %36, %37, %cst_25 {dimension_numbers = #tpu.dot_dimension_numbers<[1], [0], [0], [1], [0, 0, 1, 1], [], []>} : vector<16x128xf32>, vector<128x128xf32>, vector<16x128xf32> -> vector<16x128xf32>
      %c0_26 = arith.constant 0 : index
      %c0_27 = arith.constant 0 : index
      %39 = vector.load %arg8[%c0_26, %c0_27] : memref<1x128xf32, #tpu.memory_space<vmem>>, vector<1x128xf32>
      %40 = vector.broadcast %39 : vector<1x128xf32> to vector<16x128xf32>
      %41 = arith.addf %38, %40 : vector<16x128xf32>
      %cst_28 = arith.constant 0.000000e+00 : f32
      %42 = vector.broadcast %cst_28 : f32 to vector<16x128xf32>
      %43 = arith.maximumf %41, %42 : vector<16x128xf32>
      %c0_29 = arith.constant 0 : index
      %c0_30 = arith.constant 0 : index
      %44 = vector.load %arg9[%c0_29, %c0_30] : memref<128x128xf32, #tpu.memory_space<vmem>>, vector<128x128xf32>
      %cst_31 = arith.constant dense<0.000000e+00> : vector<16x128xf32>
      %45 = tpu.matmul %43, %44, %cst_31 {dimension_numbers = #tpu.dot_dimension_numbers<[1], [0], [0], [1], [0, 0, 1, 1], [], []>} : vector<16x128xf32>, vector<128x128xf32>, vector<16x128xf32> -> vector<16x128xf32>
      %c0_32 = arith.constant 0 : index
      %c0_33 = arith.constant 0 : index
      %46 = vector.load %arg10[%c0_32, %c0_33] : memref<1x128xf32, #tpu.memory_space<vmem>>, vector<1x128xf32>
      %47 = vector.broadcast %46 : vector<1x128xf32> to vector<16x128xf32>
      %48 = arith.addf %45, %47 : vector<16x128xf32>
      %cst_34 = arith.constant 0.000000e+00 : f32
      %49 = vector.broadcast %cst_34 : f32 to vector<16x128xf32>
      %50 = arith.maximumf %48, %49 : vector<16x128xf32>
      %c0_35 = arith.constant 0 : index
      %c0_36 = arith.constant 0 : index
      %51 = vector.load %arg5[%c0_35, %c0_36] : memref<1x16xi32, #tpu.memory_space<vmem>>, vector<1x16xi32>
      %52 = tpu.iota {dimensions = array<i32: 0>} : vector<8x16xi32>
      %53 = vector.broadcast %51 : vector<1x16xi32> to vector<8x16xi32>
      %54 = arith.cmpi eq, %52, %53 : vector<8x16xi32>
      %55 = arith.extui %54 : vector<8x16xi1> to vector<8x16xi32>
      %56 = arith.sitofp %55 : vector<8x16xi32> to vector<8x16xf32>
      %c0_37 = arith.constant 0 : index
      %c0_38 = arith.constant 0 : index
      %57 = vector.load %arg17[%c0_37, %c0_38] : memref<8x128xf32, #tpu.memory_space<vmem>>, vector<8x128xf32>
      %cst_39 = arith.constant dense<0.000000e+00> : vector<8x128xf32>
      %58 = tpu.matmul %56, %50, %cst_39 {dimension_numbers = #tpu.dot_dimension_numbers<[1], [0], [0], [1], [0, 0, 1, 1], [], []>} : vector<8x16xf32>, vector<16x128xf32>, vector<8x128xf32> -> vector<8x128xf32>
      %59 = arith.addf %57, %58 : vector<8x128xf32>
      %c0_40 = arith.constant 0 : index
      %c0_41 = arith.constant 0 : index
      %60 = vector.load %arg17[%c0_40, %c0_41] : memref<8x128xf32, #tpu.memory_space<vmem>>, vector<8x128xf32>
      tpu.vector_store %arg17[%c0_40, %c0_41], %59 {strides = array<i32>} : memref<8x128xf32, #tpu.memory_space<vmem>>, vector<8x128xf32>,
    } else {
    }
    %c0_i32_13 = arith.constant 0 : i32
    %25 = arith.cmpi eq, %arg0, %c0_i32_13 : i32
    %c0_i32_14 = arith.constant 0 : i32
    %26 = arith.cmpi eq, %arg1, %c0_i32_14 : i32
    %27 = arith.andi %25, %26 : i1
    %28 = arith.extui %27 : i1 to i32
    %c0_i32_15 = arith.constant 0 : i32
    %29 = arith.cmpi ne, %28, %c0_i32_15 : i32
    scf.if %29 {
      %c0_16 = arith.constant 0 : index
      %c0_17 = arith.constant 0 : index
      %30 = vector.load %arg17[%c0_16, %c0_17] : memref<8x128xf32, #tpu.memory_space<vmem>>, vector<8x128xf32>
      %c0_18 = arith.constant 0 : index
      %c0_19 = arith.constant 0 : index
      %31 = vector.load %arg11[%c0_18, %c0_19] : memref<128x128xf32, #tpu.memory_space<vmem>>, vector<128x128xf32>
      %cst_20 = arith.constant dense<0.000000e+00> : vector<8x128xf32>
      %32 = tpu.matmul %30, %31, %cst_20 {dimension_numbers = #tpu.dot_dimension_numbers<[1], [0], [0], [1], [0, 0, 1, 1], [], []>} : vector<8x128xf32>, vector<128x128xf32>, vector<8x128xf32> -> vector<8x128xf32>
      %c0_21 = arith.constant 0 : index
      %c0_22 = arith.constant 0 : index
      %33 = vector.load %arg12[%c0_21, %c0_22] : memref<1x128xf32, #tpu.memory_space<vmem>>, vector<1x128xf32>
      %34 = vector.broadcast %33 : vector<1x128xf32> to vector<8x128xf32>
      %35 = arith.addf %32, %34 : vector<8x128xf32>
      %cst_23 = arith.constant 0.000000e+00 : f32
      %36 = vector.broadcast %cst_23 : f32 to vector<8x128xf32>
      %37 = arith.maximumf %35, %36 : vector<8x128xf32>
      %c0_24 = arith.constant 0 : index
      %c0_25 = arith.constant 0 : index
      %38 = vector.load %arg13[%c0_24, %c0_25] : memref<128x128xf32, #tpu.memory_space<vmem>>, vector<128x128xf32>
      %cst_26 = arith.constant dense<0.000000e+00> : vector<8x128xf32>
      %39 = tpu.matmul %37, %38, %cst_26 {dimension_numbers = #tpu.dot_dimension_numbers<[1], [0], [0], [1], [0, 0, 1, 1], [], []>} : vector<8x128xf32>, vector<128x128xf32>, vector<8x128xf32> -> vector<8x128xf32>
      %c0_27 = arith.constant 0 : index
      %c0_28 = arith.constant 0 : index
      %40 = vector.load %arg14[%c0_27, %c0_28] : memref<1x128xf32, #tpu.memory_space<vmem>>, vector<1x128xf32>
      %41 = vector.broadcast %40 : vector<1x128xf32> to vector<8x128xf32>
      %42 = arith.addf %39, %41 : vector<8x128xf32>
      %c0_29 = arith.constant 0 : index
      %c0_30 = arith.constant 0 : index
      %43 = vector.load %arg15[%c0_29, %c0_30] : memref<8x128xf32, #tpu.memory_space<vmem>>, vector<8x128xf32>
      tpu.vector_store %arg15[%c0_29, %c0_30], %42 {strides = array<i32>} : memref<8x128xf32, #tpu.memory_space<vmem>>, vector<8x128xf32>,
    } else {
    }
    return
  }
  func.func @transform_0(%arg0: i32, %arg1: i32) -> (i32, i32) {
    %c0_i32 = arith.constant 0 : i32
    %c0_i32_0 = arith.constant 0 : i32
    %c0_i32_1 = arith.constant 0 : i32
    return %c0_i32, %c0_i32_0 : i32, i32
  }
  func.func @transform_1(%arg0: i32, %arg1: i32) -> (i32, i32) {
    %c0_i32 = arith.constant 0 : i32
    %c0_i32_0 = arith.constant 0 : i32
    return %arg0, %c0_i32 : i32, i32
  }
  func.func @transform_2(%arg0: i32, %arg1: i32) -> (i32, i32) {
    %c0_i32 = arith.constant 0 : i32
    %c0_i32_0 = arith.constant 0 : i32
    return %c0_i32, %arg1 : i32, i32
  }
  func.func @transform_3(%arg0: i32, %arg1: i32) -> (i32, i32) {
    %c0_i32 = arith.constant 0 : i32
    %c0_i32_0 = arith.constant 0 : i32
    return %c0_i32, %arg0 : i32, i32
  }
  func.func @transform_4(%arg0: i32, %arg1: i32) -> (i32, i32) {
    %c0_i32 = arith.constant 0 : i32
    %c0_i32_0 = arith.constant 0 : i32
    return %arg1, %c0_i32 : i32, i32
  }
  func.func @transform_5(%arg0: i32, %arg1: i32) -> (i32, i32) {
    %c0_i32 = arith.constant 0 : i32
    %c0_i32_0 = arith.constant 0 : i32
    %c0_i32_1 = arith.constant 0 : i32
    return %c0_i32, %c0_i32_0 : i32, i32
  }
  func.func @transform_6(%arg0: i32, %arg1: i32) -> (i32, i32) {
    %c0_i32 = arith.constant 0 : i32
    %c0_i32_0 = arith.constant 0 : i32
    %c0_i32_1 = arith.constant 0 : i32
    return %c0_i32, %c0_i32_0 : i32, i32
  }
  func.func @transform_7(%arg0: i32, %arg1: i32) -> (i32, i32) {
    %c0_i32 = arith.constant 0 : i32
    %c0_i32_0 = arith.constant 0 : i32
    %c0_i32_1 = arith.constant 0 : i32
    return %c0_i32, %c0_i32_0 : i32, i32
  }
  func.func @transform_8(%arg0: i32, %arg1: i32) -> (i32, i32) {
    %c0_i32 = arith.constant 0 : i32
    %c0_i32_0 = arith.constant 0 : i32
    %c0_i32_1 = arith.constant 0 : i32
    return %c0_i32, %c0_i32_0 : i32, i32
  }
  func.func @transform_9(%arg0: i32, %arg1: i32) -> (i32, i32) {
    %c0_i32 = arith.constant 0 : i32
    %c0_i32_0 = arith.constant 0 : i32
    %c0_i32_1 = arith.constant 0 : i32
    return %c0_i32, %c0_i32_0 : i32, i32
  }
  func.func @transform_10(%arg0: i32, %arg1: i32) -> (i32, i32) {
    %c0_i32 = arith.constant 0 : i32
    %c0_i32_0 = arith.constant 0 : i32
    %c0_i32_1 = arith.constant 0 : i32
    return %c0_i32, %c0_i32_0 : i32, i32
  }
  func.func @transform_11(%arg0: i32, %arg1: i32) -> (i32, i32) {
    %c0_i32 = arith.constant 0 : i32
    %c0_i32_0 = arith.constant 0 : i32
    %c0_i32_1 = arith.constant 0 : i32
    return %c0_i32, %c0_i32_0 : i32, i32
  }
  func.func @transform_12(%arg0: i32, %arg1: i32) -> (i32, i32) {
    %c0_i32 = arith.constant 0 : i32
    %c0_i32_0 = arith.constant 0 : i32
    %c0_i32_1 = arith.constant 0 : i32
    return %c0_i32, %c0_i32_0 : i32, i32
  }
  func.func @transform_13(%arg0: i32, %arg1: i32) -> (i32, i32) {
    %c0_i32 = arith.constant 0 : i32
    %c0_i32_0 = arith.constant 0 : i32
    %c0_i32_1 = arith.constant 0 : i32
    return %c0_i32, %c0_i32_0 : i32, i32
  }
}

</mosaic_0001>

<bundles_post_ra>
// kernel: gine_forward.4
= control target key start
LH: loop header
LB: loop body
LE: loop exit
PB: predicated region body
PF: predicated region fallthrough
CT: control target
= control target key end

     0   :  { %s628_s2 = inlined_call_operand.vmem [shape: f32[128,128], index: 2, kind: input, shape index: {}]   ;;  %s629_s1 = inlined_call_operand.vmem [shape: f32[128,128], index: 1, kind: input, shape index: {}]   ;;  %s630_s3 = inlined_call_operand.vmem [shape: f32[1,128], index: 3, kind: input, shape index: {}]   ;;  %s631_s0 = inlined_call_operand.vmem [shape: f32[128,128], index: 0, kind: input, shape index: {}]   ;;  %s632_s4 = inlined_call_operand.vmem [shape: f32[128,128], index: 4, kind: output, shape index: {}]  }
   0x1   :  { %v48_v0 = vld [vmem:[%s628_s2 + $0x78] sm:$0xff]  ;;  %v47_v1 = vld [vmem:[%s628_s2 + $0x70] sm:$0xff]  ;;  %v46_v2 = vld [vmem:[%s628_s2 + $0x68] sm:$0xff] }
   0x2   :  { %302 = vmatprep.subr.mxu0 %v48_v0  ;;  %358 = vmatprep.subr.mxu1 %v48_v0  ;;  %v45_v3 = vld [vmem:[%s628_s2 + $0x60] sm:$0xff]  ;;  %v44_v4 = vld [vmem:[%s628_s2 + $0x58] sm:$0xff]  ;;  %v43_v5 = vld [vmem:[%s628_s2 + $0x50] sm:$0xff] }
   0x3   :  { %303 = vmatpush3.msra.mxu0 %v48_v0  ;;  %374 = vmatpush3.msra.mxu1 %v48_v0  ;;  %v42_v6 = vld [vmem:[%s628_s2 + $0x48] sm:$0xff]  ;;  %v41_v7 = vld [vmem:[%s628_s2 + $0x40] sm:$0xff]  ;;  %v40_v8 = vld [vmem:[%s628_s2 + $0x38] sm:$0xff] }
   0x4   :  { %304 = vmatprep.subr.mxu0 %v47_v1  ;;  %359 = vmatprep.subr.mxu1 %v47_v1  ;;  %v39_v9 = vld [vmem:[%s628_s2 + $0x30] sm:$0xff]  ;;  %v38_v10 = vld [vmem:[%s628_s2 + $0x28] sm:$0xff]  ;;  %v37_v11 = vld [vmem:[%s628_s2 + $0x20] sm:$0xff] }
   0x5   :  { %305 = vmatpush3.msra.mxu0 %v47_v1  ;;  %375 = vmatpush3.msra.mxu1 %v47_v1  ;;  %v36_v12 = vld [vmem:[%s628_s2 + $0x18] sm:$0xff]  ;;  %v35_v13 = vld [vmem:[%s628_s2 + $0x10] sm:$0xff]  ;;  %v34_v14 = vld [vmem:[%s628_s2 + $0x8] sm:$0xff] }
   0x6   :  { %306 = vmatprep.subr.mxu0 %v46_v2  ;;  %360 = vmatprep.subr.mxu1 %v46_v2  ;;  %v33_v15 = vld [vmem:[%s628_s2] sm:$0xff]  ;;  %v18_v18 = vld [vmem:[%s629_s1 + $0x8] sm:$0xff]  ;;  %v19_v20 = vld [vmem:[%s629_s1 + $0x10] sm:$0xff] }
   0x7   :  { %307 = vmatpush3.msra.mxu0 %v46_v2  ;;  %376 = vmatpush3.msra.mxu1 %v46_v2  ;;  %v17_v16 = vld [vmem:[%s629_s1] sm:$0xff]  ;;  %v26_v19 = vld [vmem:[%s629_s1 + $0x48] sm:$0xff]  ;;  %v27_v21 = vld [vmem:[%s629_s1 + $0x50] sm:$0xff] }
   0x8   :  { %308 = vmatprep.subr.mxu0 %v45_v3  ;;  %361 = vmatprep.subr.mxu1 %v45_v3  ;;  %v25_v17 = vld [vmem:[%s629_s1 + $0x40] sm:$0xff]  ;;  %v20_v22 = vld [vmem:[%s629_s1 + $0x18] sm:$0xff]  ;;  %v22_v26 = vld [vmem:[%s629_s1 + $0x28] sm:$0xff] }
   0x9   :  { %309 = vmatpush3.msra.mxu0 %v45_v3  ;;  %377 = vmatpush3.msra.mxu1 %v45_v3  ;;  %v28_v23 = vld [vmem:[%s629_s1 + $0x58] sm:$0xff]  ;;  %v21_v24 = vld [vmem:[%s629_s1 + $0x20] sm:$0xff]  ;;  %v30_v27 = vld [vmem:[%s629_s1 + $0x68] sm:$0xff] }
   0xa   :  { %310 = vmatprep.subr.mxu0 %v44_v4  ;;  %362 = vmatprep.subr.mxu1 %v44_v4  ;;  %v29_v25 = vld [vmem:[%s629_s1 + $0x60] sm:$0xff]  ;;  %v23_v28 = vld [vmem:[%s629_s1 + $0x30] sm:$0xff]  ;;  %v24_v30 = vld [vmem:[%s629_s1 + $0x38] sm:$0xff] }
   0xb   :  { %311 = vmatpush3.msra.mxu0 %v44_v4  ;;  %378 = vmatpush3.msra.mxu1 %v44_v4  ;;  %v31_v29 = vld [vmem:[%s629_s1 + $0x70] sm:$0xff]  ;;  %v32_v31 = vld [vmem:[%s629_s1 + $0x78] sm:$0xff]  ;;  %v514_v32 = vld [vmem:[%s630_s3] ss:$0 sm:$0xff] }
   0xc   :  { %312 = vmatprep.subr.mxu0 %v43_v5  ;;  %363 = vmatprep.subr.mxu1 %v43_v5  ;;  %v202_v34 = vld [vmem:[%s631_s0 + $0x8] sm:$0xff]  ;;  %v201_v40 = vld [vmem:[%s631_s0] sm:$0xff]  ;;  %v204_v53 = vld [vmem:[%s631_s0 + $0x18] sm:$0xff] }
   0xd   :  { %313 = vmatpush3.msra.mxu0 %v43_v5  ;;  %379 = vmatpush3.msra.mxu1 %v43_v5  ;;  %v210_v36 = vld [vmem:[%s631_s0 + $0x48] sm:$0xff]  ;;  %v209_v42 = vld [vmem:[%s631_s0 + $0x40] sm:$0xff]  ;;  %v212_v54 = vld [vmem:[%s631_s0 + $0x58] sm:$0xff] }
   0xe   :  { %314 = vmatprep.subr.mxu0 %v42_v6  ;;  %364 = vmatprep.subr.mxu1 %v42_v6  ;;  %v203_v58 = vld [vmem:[%s631_s0 + $0x10] sm:$0xff]  ;;  %v206_v4 = vld [vmem:[%s631_s0 + $0x28] sm:$0xff] }
   0xf   :  { %315 = vmatpush3.msra.mxu0 %v42_v6  ;;  %380 = vmatpush3.msra.mxu1 %v42_v6  ;;  %v211_v60 = vld [vmem:[%s631_s0 + $0x50] sm:$0xff]  ;;  %v214_v6 = vld [vmem:[%s631_s0 + $0x68] sm:$0xff] }
  0x10   :  { %316 = vmatprep.subr.mxu0 %v41_v7  ;;  %365 = vmatprep.subr.mxu1 %v41_v7 }
  0x11   :  { %317 = vmatpush3.msra.mxu0 %v41_v7  ;;  %381 = vmatpush3.msra.mxu1 %v41_v7 }
  0x12   :  { %318 = vmatprep.subr.mxu0 %v40_v8  ;;  %366 = vmatprep.subr.mxu1 %v40_v8 }
  0x13   :  { %319 = vmatpush3.msra.mxu0 %v40_v8  ;;  %382 = vmatpush3.msra.mxu1 %v40_v8 }
  0x14   :  { %320 = vmatprep.subr.mxu0 %v39_v9  ;;  %367 = vmatprep.subr.mxu1 %v39_v9 }
  0x15   :  { %321 = vmatpush3.msra.mxu0 %v39_v9  ;;  %383 = vmatpush3.msra.mxu1 %v39_v9 }
  0x16   :  { %322 = vmatprep.subr.mxu0 %v38_v10  ;;  %368 = vmatprep.subr.mxu1 %v38_v10 }
  0x17   :  { %323 = vmatpush3.msra.mxu0 %v38_v10  ;;  %384 = vmatpush3.msra.mxu1 %v38_v10 }
  0x18   :  { %324 = vmatprep.subr.mxu0 %v37_v11  ;;  %369 = vmatprep.subr.mxu1 %v37_v11 }
  0x19   :  { %325 = vmatpush3.msra.mxu0 %v37_v11  ;;  %385 = vmatpush3.msra.mxu1 %v37_v11 }
  0x1a   :  { %326 = vmatprep.subr.mxu0 %v36_v12  ;;  %370 = vmatprep.subr.mxu1 %v36_v12 }
  0x1b   :  { %327 = vmatpush3.msra.mxu0 %v36_v12  ;;  %386 = vmatpush3.msra.mxu1 %v36_v12 }
  0x1c   :  { %328 = vmatprep.subr.mxu0 %v35_v13  ;;  %371 = vmatprep.subr.mxu1 %v35_v13 }
  0x1d   :  { %329 = vmatpush3.msra.mxu0 %v35_v13  ;;  %387 = vmatpush3.msra.mxu1 %v35_v13 }
  0x1e   :  { %330 = vmatprep.subr.mxu0 %v34_v14  ;;  %372 = vmatprep.subr.mxu1 %v34_v14 }
  0x1f   :  { %331 = vmatpush3.msra.mxu0 %v34_v14  ;;  %388 = vmatpush3.msra.mxu1 %v34_v14 }
  0x20   :  { %332 = vmatprep.subr.mxu0 %v33_v15  ;;  %373 = vmatprep.subr.mxu1 %v33_v15 }
  0x21   :  { %333 = vmatpush3.msra.mxu0 %v33_v15  ;;  %389 = vmatpush3.msra.mxu1 %v33_v15 }
  0x22   :  { %334 = vmatprep.mubr.f32.mxu0 %v17_v16  ;;  %346 = vmatprep.mubr.f32.mxu1 %v25_v17 }
  0x23   :  { %335 = vmatmul.mubr.f32.vlgmr.msra.gmra.mxu0 %v18_v18  ;;  %347 = vmatmul.mubr.f32.vlgmr.msra.gmra.mxu1 %v26_v19  ;;  %v205_v19 = vld [vmem:[%s631_s0 + $0x20] sm:$0xff] }
  0x24   :  { %337 = vmatprep.mubr.f32.mxu0 %v19_v20  ;;  %349 = vmatprep.mubr.f32.mxu1 %v27_v21  ;;  %v213_v20 = vld [vmem:[%s631_s0 + $0x60] sm:$0xff] }
  0x27   :  { %338 = vmatmul.mubr.f32.gmra.mxu0 %v20_v22  ;;  %350 = vmatmul.mubr.f32.gmra.mxu1 %v28_v23 }
  0x28   :  { %340 = vmatprep.mubr.f32.mxu0 %v21_v24  ;;  %352 = vmatprep.mubr.f32.mxu1 %v29_v25  ;;  %v208_v24 = vld [vmem:[%s631_s0 + $0x38] sm:$0xff] }
  0x2b   :  { %341 = vmatmul.mubr.f32.gmra.mxu0 %v22_v26  ;;  %353 = vmatmul.mubr.f32.gmra.mxu1 %v30_v27  ;;  %v216_v26 = vld [vmem:[%s631_s0 + $0x78] sm:$0xff] }
  0x2c   :  { %343 = vmatprep.mubr.f32.mxu0 %v23_v28  ;;  %355 = vmatprep.mubr.f32.mxu1 %v31_v29 }
  0x2f   :  { %344 = vmatmul.mubr.f32.gmra.mxu0 %v24_v30  ;;  %356 = vmatmul.mubr.f32.gmra.mxu1 %v32_v31 }
  0xe3   :  { %v336_v33 = vpop.f32.mrf.mxu0  ;;  %v348_v35 = vpop.f32.mrf.mxu1 }
  0xe4   :  { %v128_v37 = vadd.f32 %v336_v33, %v514_v32  ;;  %v168_v38 = vadd.f32 %v348_v35, %v514_v32  ;;  %v207_v35 = vld [vmem:[%s631_s0 + $0x30] sm:$0xff] }
  0xe5   :  { %v122_v39 = vpop.f32.mrf.mxu0  ;;  %v162_v41 = vpop.f32.mrf.mxu1 }
  0xe6   :  { %v218_v43 = vadd.f32 %v202_v34, %v128_v37  ;;  %v226_v44 = vadd.f32 %v210_v36, %v168_v38  ;;  %v123_v45 = vadd.f32 %v514_v32, %v122_v39  ;;  %v163_v46 = vadd.f32 %v514_v32, %v162_v41  ;;  %v215_v37 = vld [vmem:[%s631_s0 + $0x70] sm:$0xff] }
  0xe7   :  { %v339_v47 = vpop.f32.mrf.mxu0  ;;  %v351_v48 = vpop.f32.mrf.mxu1 }
  0xe8   :  { %v234_v49 = vmax.f32 %v218_v43, 0.0  ;;  %v242_v50 = vmax.f32 %v226_v44, 0.0  ;;  %v217_v51 = vadd.f32 %v201_v40, %v123_v45  ;;  %v225_v52 = vadd.f32 %v209_v42, %v163_v46 }
  0xe9   :  { %v138_v55 = vadd.f32 %v339_v47, %v514_v32  ;;  %v178_v56 = vadd.f32 %v351_v48, %v514_v32  ;;  %v132_v57 = vpop.f32.mrf.mxu0  ;;  %v172_v59 = vpop.f32.mrf.mxu1 }
  0xea   :  { %250 = vst [vmem:[%s632_s4 + $0x8] sm:$0xff] %v234_v49  ;;  %258 = vst [vmem:[%s632_s4 + $0x48] sm:$0xff] %v242_v50  ;;  %v233_v61 = vmax.f32 %v217_v51, 0.0  ;;  %v241_v62 = vmax.f32 %v225_v52, 0.0  ;;  %v133_v63 = vadd.f32 %v514_v32, %v132_v57  ;;  %v173_v0 = vadd.f32 %v514_v32, %v172_v59 }
  0xeb   :  { %v220_v1 = vadd.f32 %v204_v53, %v138_v55  ;;  %v228_v2 = vadd.f32 %v212_v54, %v178_v56  ;;  %v342_v3 = vpop.f32.mrf.mxu0  ;;  %v354_v5 = vpop.f32.mrf.mxu1 }
  0xec   :  { %249 = vst [vmem:[%s632_s4] sm:$0xff] %v233_v61  ;;  %257 = vst [vmem:[%s632_s4 + $0x40] sm:$0xff] %v241_v62  ;;  %v219_v7 = vadd.f32 %v203_v58, %v133_v63  ;;  %v227_v8 = vadd.f32 %v211_v60, %v173_v0  ;;  %v148_v9 = vadd.f32 %v342_v3, %v514_v32 }
  0xed   :  { %v188_v10 = vadd.f32 %v354_v5, %v514_v32  ;;  %v236_v11 = vmax.f32 %v220_v1, 0.0  ;;  %v244_v12 = vmax.f32 %v228_v2, 0.0  ;;  %v142_v13 = vpop.f32.mrf.mxu0  ;;  %v182_v14 = vpop.f32.mrf.mxu1 }
  0xee   :  { %v235_v15 = vmax.f32 %v219_v7, 0.0  ;;  %v243_v16 = vmax.f32 %v227_v8, 0.0  ;;  %v222_v17 = vadd.f32 %v206_v4, %v148_v9  ;;  %v143_v21 = vadd.f32 %v514_v32, %v142_v13 }
  0xef   :  { %v230_v18 = vadd.f32 %v214_v6, %v188_v10  ;;  %252 = vst [vmem:[%s632_s4 + $0x18] sm:$0xff] %v236_v11  ;;  %260 = vst [vmem:[%s632_s4 + $0x58] sm:$0xff] %v244_v12  ;;  %v183_v22 = vadd.f32 %v514_v32, %v182_v14  ;;  %v345_v23 = vpop.f32.mrf.mxu0  ;;  %v357_v25 = vpop.f32.mrf.mxu1 }
  0xf0   :  { %251 = vst [vmem:[%s632_s4 + $0x10] sm:$0xff] %v235_v15  ;;  %259 = vst [vmem:[%s632_s4 + $0x50] sm:$0xff] %v243_v16  ;;  %v238_v27 = vmax.f32 %v222_v17, 0.0  ;;  %v158_v29 = vadd.f32 %v345_v23, %v514_v32  ;;  %v198_v30 = vadd.f32 %v357_v25, %v514_v32  ;;  %v221_v31 = vadd.f32 %v205_v19, %v143_v21 }
  0xf1   :  { %v246_v28 = vmax.f32 %v230_v18, 0.0  ;;  %v229_v33 = vadd.f32 %v213_v20, %v183_v22  ;;  %v152_v34 = vpop.f32.mrf.mxu0  ;;  %v192_v36 = vpop.f32.mrf.mxu1 }
  0xf2   :  { %254 = vst [vmem:[%s632_s4 + $0x28] sm:$0xff] %v238_v27  ;;  %v224_v38 = vadd.f32 %v208_v24, %v158_v29  ;;  %v232_v39 = vadd.f32 %v216_v26, %v198_v30  ;;  %v153_v40 = vadd.f32 %v514_v32, %v152_v34  ;;  %v193_v41 = vadd.f32 %v514_v32, %v192_v36 }
  0xf3   :  { %262 = vst [vmem:[%s632_s4 + $0x68] sm:$0xff] %v246_v28  ;;  %v237_v42 = vmax.f32 %v221_v31, 0.0  ;;  %v245_v43 = vmax.f32 %v229_v33, 0.0 }
  0xf4   :  { %v240_v44 = vmax.f32 %v224_v38, 0.0  ;;  %v248_v45 = vmax.f32 %v232_v39, 0.0  ;;  %v223_v46 = vadd.f32 %v207_v35, %v153_v40  ;;  %v231_v47 = vadd.f32 %v215_v37, %v193_v41 }
  0xf5   :  { %253 = vst [vmem:[%s632_s4 + $0x20] sm:$0xff] %v237_v42  ;;  %261 = vst [vmem:[%s632_s4 + $0x60] sm:$0xff] %v245_v43 }
  0xf6   :  { %256 = vst [vmem:[%s632_s4 + $0x38] sm:$0xff] %v240_v44  ;;  %264 = vst [vmem:[%s632_s4 + $0x78] sm:$0xff] %v248_v45  ;;  %v239_v32 = vmax.f32 %v223_v46, 0.0  ;;  %v247_v48 = vmax.f32 %v231_v47, 0.0 }
  0xf8   :  { %255 = vst [vmem:[%s632_s4 + $0x30] sm:$0xff] %v239_v32  ;;  %263 = vst [vmem:[%s632_s4 + $0x70] sm:$0xff] %v247_v48 }

// kernel: gine_forward.5
= control target key start
LH: loop header
LB: loop body
LE: loop exit
PB: predicated region body
PF: predicated region fallthrough
CT: control target
= control target key end

     0   :  { %v40_v0 = vlaneseq  ;;  %v537_v10 = vmov 1.0   ;;  %s761_s3 = inlined_call_operand.vmem [shape: f32[128,128], index: 3, kind: input, shape index: {}]   ;;  %s762_s2 = inlined_call_operand.vmem [shape: s32[1,128], index: 2, kind: input, shape index: {}]   ;;  %s763_s4 = inlined_call_operand.vmem [shape: f32[128,128], index: 4, kind: input, shape index: {}]   ;;  %s764_s6 = inlined_call_operand.vmem [shape: f32[128,128], index: 6, kind: input, shape index: {}]   ;;  %s765_s0 = inlined_call_operand.<no memory space> [shape: f32[1,1], index: 0, kind: input, shape index: {}]   ;;  %s766_s1 = inlined_call_operand.vmem [shape: f32[16,128], index: 1, kind: input, shape index: {}]   ;;  %s767_s5 = inlined_call_operand.vmem [shape: f32[1,128], index: 5, kind: input, shape index: {}]   ;;  %s768_s7 = inlined_call_operand.vmem [shape: f32[1,128], index: 7, kind: input, shape index: {}]   ;;  %s769_s8 = inlined_call_operand.vmem [shape: f32[16,128], index: 8, kind: output, shape index: {}]  }
   0x1   :  { %v70_v1 = vld [vmem:[%s761_s3 + $0x78] sm:$0xff]  ;;  %v69_v2 = vld [vmem:[%s761_s3 + $0x70] sm:$0xff]  ;;  %v68_v3 = vld [vmem:[%s761_s3 + $0x68] sm:$0xff]  ;;  %s154_s24 = sadd.f32 1.0, %s765_s0 }
   0x2   :  { %431 = vmatprep.subr.mxu0 %v70_v1  ;;  %v592_v4 = vshrl.u32 %v40_v0, 7  ;;  %v67_v5 = vld [vmem:[%s761_s3 + $0x60] sm:$0xff]  ;;  %v179_v7 = vld [vmem:[%s763_s4 + $0x78] sm:$0xff]  ;;  %v178_v9 = vld [vmem:[%s763_s4 + $0x70] sm:$0xff] }
   0x3   :  { %432 = vmatpush3.msra.mxu0 %v70_v1  ;;  %v600_v6 = vld [vmem:[%s762_s2] ss:$0 sm:$0xff]  ;;  %v66_v8 = vld [vmem:[%s761_s3 + $0x58] sm:$0xff]  ;;  %466 = vmatprep.subr.mxu1 %v179_v7  ;;  %v65_v11 = vld [vmem:[%s761_s3 + $0x50] sm:$0xff]  ;;  %v157_v51 = vstv %s154_s24 }
   0x4   :  { %433 = vmatprep.subr.mxu0 %v69_v2  ;;  %vm47_vm0 = vcmp.eq.s32.totalorder %v592_v4, %v600_v6  ;;  %467 = vmatpush3.msra.mxu1 %v179_v7  ;;  %v177_v12 = vld [vmem:[%s763_s4 + $0x68] sm:$0xff]  ;;  %v176_v14 = vld [vmem:[%s763_s4 + $0x60] sm:$0xff]  ;;  %v175_v16 = vld [vmem:[%s763_s4 + $0x58] sm:$0xff]  ;;  %v42_v30 = vadd.s32 8, %v592_v4 }
   0x5   :  { %434 = vmatpush3.msra.mxu0 %v69_v2  ;;  %463 = vmatprep.mubr.msk.f32.mxu0 %vm47_vm0, %v537_v10  ;;  %v64_v13 = vld [vmem:[%s761_s3 + $0x48] sm:$0xff]  ;;  %v63_v15 = vld [vmem:[%s761_s3 + $0x40] sm:$0xff]  ;;  %v62_v17 = vld [vmem:[%s761_s3 + $0x38] sm:$0xff] }
   0x6   :  { %435 = vmatprep.subr.mxu0 %v68_v3  ;;  %468 = vmatprep.subr.mxu1 %v178_v9  ;;  %v174_v18 = vld [vmem:[%s763_s4 + $0x50] sm:$0xff]  ;;  %v173_v20 = vld [vmem:[%s763_s4 + $0x48] sm:$0xff]  ;;  %v172_v22 = vld [vmem:[%s763_s4 + $0x40] sm:$0xff]  ;;  %vm48_vm1 = vcmp.eq.s32.totalorder %v42_v30, %v600_v6 }
   0x7   :  { %436 = vmatpush3.msra.mxu0 %v68_v3  ;;  %469 = vmatpush3.msra.mxu1 %v178_v9  ;;  %v61_v19 = vld [vmem:[%s761_s3 + $0x30] sm:$0xff]  ;;  %v60_v21 = vld [vmem:[%s761_s3 + $0x28] sm:$0xff]  ;;  %v59_v23 = vld [vmem:[%s761_s3 + $0x20] sm:$0xff] }
   0x8   :  { %437 = vmatprep.subr.mxu0 %v67_v5  ;;  %470 = vmatprep.subr.mxu1 %v177_v12  ;;  %v171_v24 = vld [vmem:[%s763_s4 + $0x38] sm:$0xff]  ;;  %v170_v26 = vld [vmem:[%s763_s4 + $0x30] sm:$0xff]  ;;  %v169_v28 = vld [vmem:[%s763_s4 + $0x28] sm:$0xff] }
   0x9   :  { %438 = vmatpush3.msra.mxu0 %v67_v5  ;;  %471 = vmatpush3.msra.mxu1 %v177_v12  ;;  %v58_v25 = vld [vmem:[%s761_s3 + $0x18] sm:$0xff]  ;;  %v57_v27 = vld [vmem:[%s761_s3 + $0x10] sm:$0xff]  ;;  %v56_v29 = vld [vmem:[%s761_s3 + $0x8] sm:$0xff] }
   0xa   :  { %439 = vmatprep.subr.mxu0 %v66_v8  ;;  %472 = vmatprep.subr.mxu1 %v176_v14  ;;  %v168_v31 = vld [vmem:[%s763_s4 + $0x20] sm:$0xff]  ;;  %v167_v33 = vld [vmem:[%s763_s4 + $0x18] sm:$0xff]  ;;  %v166_v34 = vld [vmem:[%s763_s4 + $0x10] sm:$0xff] }
   0xb   :  { %440 = vmatpush3.msra.mxu0 %v66_v8  ;;  %473 = vmatpush3.msra.mxu1 %v176_v14  ;;  %v55_v32 = vld [vmem:[%s761_s3] sm:$0xff]  ;;  %v165_v35 = vld [vmem:[%s763_s4 + $0x8] sm:$0xff]  ;;  %v279_v37 = vld [vmem:[%s764_s6 + $0x78] sm:$0xff] }
   0xc   :  { %441 = vmatprep.subr.mxu0 %v65_v11  ;;  %474 = vmatprep.subr.mxu1 %v175_v16  ;;  %v164_v36 = vld [vmem:[%s763_s4] sm:$0xff]  ;;  %v278_v38 = vld [vmem:[%s764_s6 + $0x70] sm:$0xff]  ;;  %v277_v39 = vld [vmem:[%s764_s6 + $0x68] sm:$0xff] }
   0xd   :  { %442 = vmatpush3.msra.mxu0 %v65_v11  ;;  %475 = vmatpush3.msra.mxu1 %v175_v16  ;;  %v276_v40 = vld [vmem:[%s764_s6 + $0x60] sm:$0xff]  ;;  %v275_v41 = vld [vmem:[%s764_s6 + $0x58] sm:$0xff]  ;;  %v274_v42 = vld [vmem:[%s764_s6 + $0x50] sm:$0xff] }
   0xe   :  { %443 = vmatprep.subr.mxu0 %v64_v13  ;;  %476 = vmatprep.subr.mxu1 %v174_v18  ;;  %v273_v43 = vld [vmem:[%s764_s6 + $0x48] sm:$0xff]  ;;  %v272_v44 = vld [vmem:[%s764_s6 + $0x40] sm:$0xff]  ;;  %v271_v45 = vld [vmem:[%s764_s6 + $0x38] sm:$0xff] }
   0xf   :  { %444 = vmatpush3.msra.mxu0 %v64_v13  ;;  %477 = vmatpush3.msra.mxu1 %v174_v18  ;;  %v270_v46 = vld [vmem:[%s764_s6 + $0x30] sm:$0xff]  ;;  %v269_v47 = vld [vmem:[%s764_s6 + $0x28] sm:$0xff]  ;;  %v268_v48 = vld [vmem:[%s764_s6 + $0x20] sm:$0xff] }
  0x10   :  { %445 = vmatprep.subr.mxu0 %v63_v15  ;;  %478 = vmatprep.subr.mxu1 %v173_v20  ;;  %v155_v49 = vld [vmem:[%s766_s1] sm:$0xff]  ;;  %v156_v50 = vld [vmem:[%s766_s1 + $0x8] sm:$0xff]  ;;  %v267_v58 = vld [vmem:[%s764_s6 + $0x18] sm:$0xff] }
  0x11   :  { %446 = vmatpush3.msra.mxu0 %v63_v15  ;;  %479 = vmatpush3.msra.mxu1 %v173_v20  ;;  %v158_v52 = vmul.f32 %v157_v51, %v155_v49  ;;  %v159_v54 = vmul.f32 %v157_v51, %v156_v50  ;;  %v266_v59 = vld [vmem:[%s764_s6 + $0x10] sm:$0xff]  ;;  %v265_v60 = vld [vmem:[%s764_s6 + $0x8] sm:$0xff]  ;;  %v264_v61 = vld [vmem:[%s764_s6] sm:$0xff] }
  0x12   :  { %447 = vmatprep.subr.mxu0 %v62_v17  ;;  %480 = vmatprep.subr.mxu1 %v172_v22  ;;  %v375_v62 = vld [vmem:[%s767_s5] ss:$0 sm:$0xff] }
  0x13   :  { %448 = vmatpush3.msra.mxu0 %v62_v17  ;;  %481 = vmatpush3.msra.mxu1 %v172_v22  ;;  %v376_v5 = vld [vmem:[%s768_s7] ss:$0 sm:$0xff] }
  0x14   :  { %449 = vmatprep.subr.mxu0 %v61_v19  ;;  %482 = vmatprep.subr.mxu1 %v171_v24 }
  0x15   :  { %450 = vmatpush3.msra.mxu0 %v61_v19  ;;  %483 = vmatpush3.msra.mxu1 %v171_v24 }
  0x16   :  { %451 = vmatprep.subr.mxu0 %v60_v21  ;;  %484 = vmatprep.subr.mxu1 %v170_v26 }
  0x17   :  { %452 = vmatpush3.msra.mxu0 %v60_v21  ;;  %485 = vmatpush3.msra.mxu1 %v170_v26 }
  0x18   :  { %453 = vmatprep.subr.mxu0 %v59_v23  ;;  %486 = vmatprep.subr.mxu1 %v169_v28 }
  0x19   :  { %454 = vmatpush3.msra.mxu0 %v59_v23  ;;  %487 = vmatpush3.msra.mxu1 %v169_v28 }
  0x1a   :  { %455 = vmatprep.subr.mxu0 %v58_v25  ;;  %488 = vmatprep.subr.mxu1 %v168_v31 }
  0x1b   :  { %456 = vmatpush3.msra.mxu0 %v58_v25  ;;  %489 = vmatpush3.msra.mxu1 %v168_v31 }
  0x1c   :  { %457 = vmatprep.subr.mxu0 %v57_v27  ;;  %490 = vmatprep.subr.mxu1 %v167_v33 }
  0x1d   :  { %458 = vmatpush3.msra.mxu0 %v57_v27  ;;  %491 = vmatpush3.msra.mxu1 %v167_v33 }
  0x1e   :  { %459 = vmatprep.subr.mxu0 %v56_v29  ;;  %492 = vmatprep.subr.mxu1 %v166_v34 }
  0x1f   :  { %460 = vmatpush3.msra.mxu0 %v56_v29  ;;  %493 = vmatpush3.msra.mxu1 %v166_v34 }
  0x20   :  { %461 = vmatprep.subr.mxu0 %v55_v32  ;;  %494 = vmatprep.subr.mxu1 %v165_v35 }
  0x21   :  { %462 = vmatpush3.msra.mxu0 %v55_v32  ;;  %495 = vmatpush3.msra.mxu1 %v165_v35 }
  0x22   :  { %464 = vmatmul.mubr.msk.f32.vlgmr.msra.gmra.mxu0 %vm48_vm1, %v537_v10  ;;  %496 = vmatprep.subr.mxu1 %v164_v36 }
  0x23   :  { %497 = vmatpush3.msra.mxu1 %v164_v36  ;;  %501 = vmatprep.subr.mxu0 %v279_v37 }
  0x24   :  { %502 = vmatpush3.msra.mxu0 %v279_v37 }
  0x25   :  { %503 = vmatprep.subr.mxu0 %v278_v38 }
  0x26   :  { %504 = vmatpush3.msra.mxu0 %v278_v38 }
  0x27   :  { %505 = vmatprep.subr.mxu0 %v277_v39 }
  0x28   :  { %506 = vmatpush3.msra.mxu0 %v277_v39 }
  0x29   :  { %507 = vmatprep.subr.mxu0 %v276_v40 }
  0x2a   :  { %508 = vmatpush3.msra.mxu0 %v276_v40 }
  0x2b   :  { %509 = vmatprep.subr.mxu0 %v275_v41 }
  0x2c   :  { %510 = vmatpush3.msra.mxu0 %v275_v41 }
  0x2d   :  { %511 = vmatprep.subr.mxu0 %v274_v42 }
  0x2e   :  { %512 = vmatpush3.msra.mxu0 %v274_v42 }
  0x2f   :  { %513 = vmatprep.subr.mxu0 %v273_v43 }
  0x30   :  { %514 = vmatpush3.msra.mxu0 %v273_v43 }
  0x31   :  { %515 = vmatprep.subr.mxu0 %v272_v44 }
  0x32   :  { %516 = vmatpush3.msra.mxu0 %v272_v44 }
  0x33   :  { %517 = vmatprep.subr.mxu0 %v271_v45 }
  0x34   :  { %518 = vmatpush3.msra.mxu0 %v271_v45 }
  0x35   :  { %519 = vmatprep.subr.mxu0 %v270_v46 }
  0x36   :  { %520 = vmatpush3.msra.mxu0 %v270_v46 }
  0x37   :  { %521 = vmatprep.subr.mxu0 %v269_v47 }
  0x38   :  { %522 = vmatpush3.msra.mxu0 %v269_v47 }
  0x39   :  { %523 = vmatprep.subr.mxu0 %v268_v48 }
  0x3a   :  { %524 = vmatpush3.msra.mxu0 %v268_v48 }
  0x3b   :  { %525 = vmatprep.subr.mxu0 %v267_v58 }
  0x3c   :  { %526 = vmatpush3.msra.mxu0 %v267_v58 }
  0x3d   :  { %527 = vmatprep.subr.mxu0 %v266_v59 }
  0x3e   :  { %528 = vmatpush3.msra.mxu0 %v266_v59 }
  0x3f   :  { %529 = vmatprep.subr.mxu0 %v265_v60 }
  0x40   :  { %530 = vmatpush3.msra.mxu0 %v265_v60 }
  0x41   :  { %531 = vmatprep.subr.mxu0 %v264_v61 }
  0x42   :  { %532 = vmatpush3.msra.mxu0 %v264_v61 }
  0xe2   :  { %v465_v53 = vpop.f32.mrf.mxu0 }
  0xe3   :  { %v163_v57 = vadd.f32 %v465_v53, %v159_v54 }
  0xe4   :  { %v137_v55 = vpop.f32.mrf.mxu0 }
  0xe5   :  { %v162_v56 = vadd.f32 %v158_v52, %v137_v55 }
  0xe7   :  { %498 = vmatprep.mubr.f32.mxu1 %v162_v56 }
  0xe8   :  { %499 = vmatmul.mubr.f32.vlgmr.msra.gmra.mxu1 %v163_v57 }
 0x1a8   :  { %v500_v63 = vpop.f32.mrf.mxu1 }
 0x1a9   :  { %v259_v0 = vadd.f32 %v500_v63, %v375_v62 }
 0x1aa   :  { %v253_v1 = vpop.f32.mrf.mxu1 }
 0x1ab   :  { %v254_v2 = vadd.f32 %v375_v62, %v253_v1  ;;  %v263_v4 = vmax.f32 %v259_v0, 0.0 }
 0x1ad   :  { %v262_v3 = vmax.f32 %v254_v2, 0.0 }
 0x1af   :  { %533 = vmatprep.mubr.f32.mxu0 %v262_v3 }
 0x1b0   :  { %534 = vmatmul.mubr.f32.vlgmr.msra.gmra.mxu0 %v263_v4 }
 0x270   :  { %v535_v6 = vpop.f32.mrf.mxu0 }
 0x271   :  { %v359_v7 = vadd.f32 %v535_v6, %v376_v5 }
 0x272   :  { %v353_v8 = vpop.f32.mrf.mxu0 }
 0x273   :  { %v363_v9 = vmax.f32 %v359_v7, 0.0  ;;  %v354_v10 = vadd.f32 %v376_v5, %v353_v8 }
 0x275   :  { %365 = vst [vmem:[%s769_s8 + $0x8] sm:$0xff] %v363_v9  ;;  %v362_v11 = vmax.f32 %v354_v10, 0.0 }
 0x277   :  { %364 = vst [vmem:[%s769_s8] sm:$0xff] %v362_v11 }

// kernel: gine_forward.7
= control target key start
LH: loop header
LB: loop body
LE: loop exit
PB: predicated region body
PF: predicated region fallthrough
CT: control target
= control target key end

     0   :  { %v61_v0 = vlaneseq  ;;  %v953_v10 = vmov 1.0   ;;  %vm955_vm2 = vmmov 0   ;;  %vm394_vm4 = vcmask 130048   ;;  %s1348_s4 = inlined_call_operand.vmem [shape: f32[128,128], index: 4, kind: input, shape index: {}]   ;;  %s1349_s2 = inlined_call_operand.vmem [shape: s32[1,128], index: 2, kind: input, shape index: {}]   ;;  %s1350_s5 = inlined_call_operand.vmem [shape: f32[128,128], index: 5, kind: input, shape index: {}]   ;;  %s1351_s7 = inlined_call_operand.vmem [shape: f32[128,128], index: 7, kind: input, shape index: {}]   ;;  %s1352_s0 = inlined_call_operand.<no memory space> [shape: f32[1,1], index: 0, kind: input, shape index: {}]   ;;  %s1353_s1 = inlined_call_operand.vmem [shape: f32[16,128], index: 1, kind: input, shape index: {}]   ;;  %s1354_s6 = inlined_call_operand.vmem [shape: f32[1,128], index: 6, kind: input, shape index: {}]   ;;  %s1355_s8 = inlined_call_operand.vmem [shape: f32[1,128], index: 8, kind: input, shape index: {}]   ;;  %s1356_s3 = inlined_call_operand.vmem [shape: s32[1,16], index: 3, kind: input, shape index: {}]   ;;  %s1357_s9 = inlined_call_operand.vmem [shape: f32[128,128], index: 9, kind: input, shape index: {}]   ;;  %s1358_s11 = inlined_call_operand.vmem [shape: f32[128,128], index: 11, kind: input, shape index: {}]   ;;  %s1359_s10 = inlined_call_operand.vmem [shape: f32[1,128], index: 10, kind: input, shape index: {}]   ;;  %s1360_s12 = inlined_call_operand.vmem [shape: f32[1,128], index: 12, kind: input, shape index: {}]   ;;  %s1361_s13 = inlined_call_operand.vmem [shape: f32[8,128], index: 13, kind: output, shape index: {}]  }
   0x1   :  { %v91_v1 = vld [vmem:[%s1348_s4 + $0x78] sm:$0xff]  ;;  %v90_v2 = vld [vmem:[%s1348_s4 + $0x70] sm:$0xff]  ;;  %v89_v3 = vld [vmem:[%s1348_s4 + $0x68] sm:$0xff] }
   0x2   :  { %768 = vmatprep.subr.mxu0 %v91_v1  ;;  %v1035_v4 = vshrl.u32 %v61_v0, 7  ;;  %v88_v5 = vld [vmem:[%s1348_s4 + $0x60] sm:$0xff]  ;;  %v200_v7 = vld [vmem:[%s1350_s5 + $0x78] sm:$0xff]  ;;  %v199_v9 = vld [vmem:[%s1350_s5 + $0x70] sm:$0xff] }
   0x3   :  { %769 = vmatpush3.msra.mxu0 %v91_v1  ;;  %v1043_v6 = vld [vmem:[%s1349_s2] ss:$0 sm:$0xff]  ;;  %v87_v8 = vld [vmem:[%s1348_s4 + $0x58] sm:$0xff]  ;;  %803 = vmatprep.subr.mxu1 %v200_v7  ;;  %v86_v11 = vld [vmem:[%s1348_s4 + $0x50] sm:$0xff] }
   0x4   :  { %770 = vmatprep.subr.mxu0 %v90_v2  ;;  %vm68_vm0 = vcmp.eq.s32.totalorder %v1035_v4, %v1043_v6  ;;  %804 = vmatpush3.msra.mxu1 %v200_v7  ;;  %v198_v12 = vld [vmem:[%s1350_s5 + $0x68] sm:$0xff]  ;;  %v197_v14 = vld [vmem:[%s1350_s5 + $0x60] sm:$0xff]  ;;  %v196_v16 = vld [vmem:[%s1350_s5 + $0x58] sm:$0xff]  ;;  %v63_v30 = vadd.s32 8, %v1035_v4 }
   0x5   :  { %771 = vmatpush3.msra.mxu0 %v90_v2  ;;  %800 = vmatprep.mubr.msk.f32.mxu0 %vm68_vm0, %v953_v10  ;;  %v85_v13 = vld [vmem:[%s1348_s4 + $0x48] sm:$0xff]  ;;  %v84_v15 = vld [vmem:[%s1348_s4 + $0x40] sm:$0xff]  ;;  %v83_v17 = vld [vmem:[%s1348_s4 + $0x38] sm:$0xff] }
   0x6   :  { %772 = vmatprep.subr.mxu0 %v89_v3  ;;  %805 = vmatprep.subr.mxu1 %v199_v9  ;;  %v195_v18 = vld [vmem:[%s1350_s5 + $0x50] sm:$0xff]  ;;  %v194_v20 = vld [vmem:[%s1350_s5 + $0x48] sm:$0xff]  ;;  %v193_v22 = vld [vmem:[%s1350_s5 + $0x40] sm:$0xff]  ;;  %vm69_vm1 = vcmp.eq.s32.totalorder %v63_v30, %v1043_v6  ;;  %v954_v6 = vmov 0.0  }
   0x7   :  { %773 = vmatpush3.msra.mxu0 %v89_v3  ;;  %806 = vmatpush3.msra.mxu1 %v199_v9  ;;  %v82_v19 = vld [vmem:[%s1348_s4 + $0x30] sm:$0xff]  ;;  %v81_v21 = vld [vmem:[%s1348_s4 + $0x28] sm:$0xff]  ;;  %v80_v23 = vld [vmem:[%s1348_s4 + $0x20] sm:$0xff] }
   0x8   :  { %774 = vmatprep.subr.mxu0 %v88_v5  ;;  %807 = vmatprep.subr.mxu1 %v198_v12  ;;  %v192_v24 = vld [vmem:[%s1350_s5 + $0x38] sm:$0xff]  ;;  %v191_v26 = vld [vmem:[%s1350_s5 + $0x30] sm:$0xff]  ;;  %v190_v28 = vld [vmem:[%s1350_s5 + $0x28] sm:$0xff] }
   0x9   :  { %775 = vmatpush3.msra.mxu0 %v88_v5  ;;  %808 = vmatpush3.msra.mxu1 %v198_v12  ;;  %v79_v25 = vld [vmem:[%s1348_s4 + $0x18] sm:$0xff]  ;;  %v78_v27 = vld [vmem:[%s1348_s4 + $0x10] sm:$0xff]  ;;  %v77_v29 = vld [vmem:[%s1348_s4 + $0x8] sm:$0xff] }
   0xa   :  { %776 = vmatprep.subr.mxu0 %v87_v8  ;;  %809 = vmatprep.subr.mxu1 %v197_v14  ;;  %v189_v31 = vld [vmem:[%s1350_s5 + $0x20] sm:$0xff]  ;;  %v188_v33 = vld [vmem:[%s1350_s5 + $0x18] sm:$0xff]  ;;  %v187_v34 = vld [vmem:[%s1350_s5 + $0x10] sm:$0xff] }
   0xb   :  { %777 = vmatpush3.msra.mxu0 %v87_v8  ;;  %810 = vmatpush3.msra.mxu1 %v197_v14  ;;  %v76_v32 = vld [vmem:[%s1348_s4] sm:$0xff]  ;;  %v186_v35 = vld [vmem:[%s1350_s5 + $0x8] sm:$0xff]  ;;  %v300_v37 = vld [vmem:[%s1351_s7 + $0x78] sm:$0xff] }
   0xc   :  { %778 = vmatprep.subr.mxu0 %v86_v11  ;;  %811 = vmatprep.subr.mxu1 %v196_v16  ;;  %v185_v36 = vld [vmem:[%s1350_s5] sm:$0xff]  ;;  %v299_v38 = vld [vmem:[%s1351_s7 + $0x70] sm:$0xff]  ;;  %v298_v39 = vld [vmem:[%s1351_s7 + $0x68] sm:$0xff]  ;;  %s175_s5 = sadd.f32 1.0, %s1352_s0 }
   0xd   :  { %779 = vmatpush3.msra.mxu0 %v86_v11  ;;  %812 = vmatpush3.msra.mxu1 %v196_v16  ;;  %v297_v40 = vld [vmem:[%s1351_s7 + $0x60] sm:$0xff]  ;;  %v296_v41 = vld [vmem:[%s1351_s7 + $0x58] sm:$0xff]  ;;  %v295_v42 = vld [vmem:[%s1351_s7 + $0x50] sm:$0xff] }
   0xe   :  { %780 = vmatprep.subr.mxu0 %v85_v13  ;;  %813 = vmatprep.subr.mxu1 %v195_v18  ;;  %v294_v43 = vld [vmem:[%s1351_s7 + $0x48] sm:$0xff]  ;;  %v293_v44 = vld [vmem:[%s1351_s7 + $0x40] sm:$0xff]  ;;  %v292_v45 = vld [vmem:[%s1351_s7 + $0x38] sm:$0xff]  ;;  %v178_v51 = vstv %s175_s5 }
   0xf   :  { %781 = vmatpush3.msra.mxu0 %v85_v13  ;;  %814 = vmatpush3.msra.mxu1 %v195_v18  ;;  %v291_v46 = vld [vmem:[%s1351_s7 + $0x30] sm:$0xff]  ;;  %v290_v47 = vld [vmem:[%s1351_s7 + $0x28] sm:$0xff]  ;;  %v289_v48 = vld [vmem:[%s1351_s7 + $0x20] sm:$0xff] }
  0x10   :  { %782 = vmatprep.subr.mxu0 %v84_v15  ;;  %815 = vmatprep.subr.mxu1 %v194_v20  ;;  %v176_v49 = vld [vmem:[%s1353_s1] sm:$0xff]  ;;  %v177_v50 = vld [vmem:[%s1353_s1 + $0x8] sm:$0xff]  ;;  %v288_v58 = vld [vmem:[%s1351_s7 + $0x18] sm:$0xff] }
  0x11   :  { %783 = vmatpush3.msra.mxu0 %v84_v15  ;;  %816 = vmatpush3.msra.mxu1 %v194_v20  ;;  %v179_v52 = vmul.f32 %v178_v51, %v176_v49  ;;  %v180_v54 = vmul.f32 %v178_v51, %v177_v50  ;;  %v287_v59 = vld [vmem:[%s1351_s7 + $0x10] sm:$0xff]  ;;  %v286_v60 = vld [vmem:[%s1351_s7 + $0x8] sm:$0xff]  ;;  %v285_v61 = vld [vmem:[%s1351_s7] sm:$0xff] }
  0x12   :  { %784 = vmatprep.subr.mxu0 %v83_v17  ;;  %817 = vmatprep.subr.mxu1 %v193_v22  ;;  %v670_v62 = vld [vmem:[%s1354_s6] ss:$0 sm:$0xff]  ;;  %v488_v16 = vld [vmem:[%s1357_s9 + $0x78] sm:$0xff]  ;;  %v483_v20 = vld [vmem:[%s1357_s9 + $0x50] sm:$0xff] }
  0x13   :  { %785 = vmatpush3.msra.mxu0 %v83_v17  ;;  %818 = vmatpush3.msra.mxu1 %v193_v22  ;;  %v671_v7 = vld [vmem:[%s1355_s8] ss:$0 sm:$0xff]  ;;  %v486_v17 = vld [vmem:[%s1357_s9 + $0x68] sm:$0xff] }
  0x14   :  { %786 = vmatprep.subr.mxu0 %v82_v19  ;;  %819 = vmatprep.subr.mxu1 %v192_v24  ;;  %v672_v8 = vld [vmem:[%s1356_s3] ss:$0 sm:$0xff] }
  0x15   :  { %787 = vmatpush3.msra.mxu0 %v82_v19  ;;  %820 = vmatpush3.msra.mxu1 %v192_v24  ;;  %vm390_vm3 = vcmp.eq.s32.totalorder %v1035_v4, %v672_v8  ;;  %v487_v4 = vld [vmem:[%s1357_s9 + $0x70] sm:$0xff]  ;;  %v485_v18 = vld [vmem:[%s1357_s9 + $0x60] sm:$0xff]  ;;  %v484_v19 = vld [vmem:[%s1357_s9 + $0x58] sm:$0xff] }
  0x16   :  { %788 = vmatprep.subr.mxu0 %v81_v21  ;;  %821 = vmatprep.subr.mxu1 %v191_v26  ;;  %v673_v15 = vsel %vm390_vm3, 1.0, %v954_v6  ;;  %v481_v22 = vld [vmem:[%s1357_s9 + $0x40] sm:$0xff]  ;;  %v479_v24 = vld [vmem:[%s1357_s9 + $0x30] sm:$0xff] }
  0x17   :  { %789 = vmatpush3.msra.mxu0 %v81_v21  ;;  %822 = vmatpush3.msra.mxu1 %v191_v26  ;;  %v482_v21 = vld [vmem:[%s1357_s9 + $0x48] sm:$0xff]  ;;  %v477_v26 = vld [vmem:[%s1357_s9 + $0x20] sm:$0xff] }
  0x18   :  { %790 = vmatprep.subr.mxu0 %v80_v23  ;;  %823 = vmatprep.subr.mxu1 %v190_v28  ;;  %v473_v30 = vld [vmem:[%s1357_s9] sm:$0xff] }
  0x19   :  { %791 = vmatpush3.msra.mxu0 %v80_v23  ;;  %824 = vmatpush3.msra.mxu1 %v190_v28  ;;  %v480_v23 = vld [vmem:[%s1357_s9 + $0x38] sm:$0xff]  ;;  %v475_v28 = vld [vmem:[%s1357_s9 + $0x10] sm:$0xff]  ;;  %v675_v49 = vld [vmem:[%s1359_s10] ss:$0 sm:$0xff] }
  0x1a   :  { %792 = vmatprep.subr.mxu0 %v79_v25  ;;  %825 = vmatprep.subr.mxu1 %v189_v31 }
  0x1b   :  { %793 = vmatpush3.msra.mxu0 %v79_v25  ;;  %826 = vmatpush3.msra.mxu1 %v189_v31  ;;  %v478_v25 = vld [vmem:[%s1357_s9 + $0x28] sm:$0xff]  ;;  %v582_v31 = vld [vmem:[%s1358_s11 + $0x78] sm:$0xff] }
  0x1c   :  { %794 = vmatprep.subr.mxu0 %v78_v27  ;;  %827 = vmatprep.subr.mxu1 %v188_v33 }
  0x1d   :  { %795 = vmatpush3.msra.mxu0 %v78_v27  ;;  %828 = vmatpush3.msra.mxu1 %v188_v33  ;;  %v476_v27 = vld [vmem:[%s1357_s9 + $0x18] sm:$0xff]  ;;  %v580_v33 = vld [vmem:[%s1358_s11 + $0x68] sm:$0xff] }
  0x1e   :  { %796 = vmatprep.subr.mxu0 %v77_v29  ;;  %829 = vmatprep.subr.mxu1 %v187_v34 }
  0x1f   :  { %797 = vmatpush3.msra.mxu0 %v77_v29  ;;  %830 = vmatpush3.msra.mxu1 %v187_v34  ;;  %v474_v29 = vld [vmem:[%s1357_s9 + $0x8] sm:$0xff]  ;;  %v579_v34 = vld [vmem:[%s1358_s11 + $0x60] sm:$0xff] }
  0x20   :  { %798 = vmatprep.subr.mxu0 %v76_v32  ;;  %831 = vmatprep.subr.mxu1 %v186_v35 }
  0x21   :  { %799 = vmatpush3.msra.mxu0 %v76_v32  ;;  %832 = vmatpush3.msra.mxu1 %v186_v35  ;;  %v581_v32 = vld [vmem:[%s1358_s11 + $0x70] sm:$0xff]  ;;  %v578_v35 = vld [vmem:[%s1358_s11 + $0x58] sm:$0xff] }
  0x22   :  { %801 = vmatmul.mubr.msk.f32.vlgmr.msra.gmra.mxu0 %vm69_vm1, %v953_v10  ;;  %833 = vmatprep.subr.mxu1 %v185_v36 }
  0x23   :  { %834 = vmatpush3.msra.mxu1 %v185_v36  ;;  %838 = vmatprep.subr.mxu0 %v300_v37  ;;  %v577_v36 = vld [vmem:[%s1358_s11 + $0x50] sm:$0xff] }
  0x24   :  { %839 = vmatpush3.msra.mxu0 %v300_v37  ;;  %873 = vmatprep.subr.mxu1 %v954_v6  ;;  %v576_v37 = vld [vmem:[%s1358_s11 + $0x48] sm:$0xff] }
  0x25   :  { %840 = vmatprep.subr.mxu0 %v299_v38 }
  0x26   :  { %841 = vmatpush3.msra.mxu0 %v299_v38  ;;  %v575_v38 = vld [vmem:[%s1358_s11 + $0x40] sm:$0xff] }
  0x27   :  { %842 = vmatprep.subr.mxu0 %v298_v39 }
  0x28   :  { %843 = vmatpush3.msra.mxu0 %v298_v39  ;;  %v574_v39 = vld [vmem:[%s1358_s11 + $0x38] sm:$0xff] }
  0x29   :  { %844 = vmatprep.subr.mxu0 %v297_v40 }
  0x2a   :  { %845 = vmatpush3.msra.mxu0 %v297_v40  ;;  %v573_v40 = vld [vmem:[%s1358_s11 + $0x30] sm:$0xff] }
  0x2b   :  { %846 = vmatprep.subr.mxu0 %v296_v41 }
  0x2c   :  { %847 = vmatpush3.msra.mxu0 %v296_v41  ;;  %v572_v41 = vld [vmem:[%s1358_s11 + $0x28] sm:$0xff] }
  0x2d   :  { %848 = vmatprep.subr.mxu0 %v295_v42 }
  0x2e   :  { %849 = vmatpush3.msra.mxu0 %v295_v42  ;;  %v571_v42 = vld [vmem:[%s1358_s11 + $0x20] sm:$0xff] }
  0x2f   :  { %850 = vmatprep.subr.mxu0 %v294_v43 }
  0x30   :  { %851 = vmatpush3.msra.mxu0 %v294_v43  ;;  %v570_v43 = vld [vmem:[%s1358_s11 + $0x18] sm:$0xff] }
  0x31   :  { %852 = vmatprep.subr.mxu0 %v293_v44 }
  0x32   :  { %853 = vmatpush3.msra.mxu0 %v293_v44 }
  0x33   :  { %854 = vmatprep.subr.mxu0 %v292_v45 }
  0x34   :  { %855 = vmatpush3.msra.mxu0 %v292_v45 }
  0x35   :  { %856 = vmatprep.subr.mxu0 %v291_v46 }
  0x36   :  { %857 = vmatpush3.msra.mxu0 %v291_v46  ;;  %v569_v46 = vld [vmem:[%s1358_s11 + $0x10] sm:$0xff] }
  0x37   :  { %858 = vmatprep.subr.mxu0 %v290_v47 }
  0x38   :  { %859 = vmatpush3.msra.mxu0 %v290_v47  ;;  %v568_v47 = vld [vmem:[%s1358_s11 + $0x8] sm:$0xff] }
  0x39   :  { %860 = vmatprep.subr.mxu0 %v289_v48 }
  0x3a   :  { %861 = vmatpush3.msra.mxu0 %v289_v48  ;;  %v567_v48 = vld [vmem:[%s1358_s11] sm:$0xff] }
  0x3b   :  { %862 = vmatprep.subr.mxu0 %v288_v58 }
  0x3c   :  { %863 = vmatpush3.msra.mxu0 %v288_v58 }
  0x3d   :  { %864 = vmatprep.subr.mxu0 %v287_v59 }
  0x3e   :  { %865 = vmatpush3.msra.mxu0 %v287_v59 }
  0x3f   :  { %866 = vmatprep.subr.mxu0 %v286_v60 }
  0x40   :  { %867 = vmatpush3.msra.mxu0 %v286_v60 }
  0x41   :  { %868 = vmatprep.subr.mxu0 %v285_v61 }
  0x42   :  { %869 = vmatpush3.msra.mxu0 %v285_v61 }
  0x43   :  { %915 = vmatprep.subr.mxu0 %v954_v6 }
  0xe2   :  { %v802_v53 = vpop.f32.mrf.mxu0 }
  0xe3   :  { %v184_v57 = vadd.f32 %v802_v53, %v180_v54  ;;  %v676_v54 = vld [vmem:[%s1360_s12] ss:$0 sm:$0xff] }
  0xe4   :  { %v158_v55 = vpop.f32.mrf.mxu0 }
  0xe5   :  { %v183_v56 = vadd.f32 %v179_v52, %v158_v55 }
  0xe7   :  { %835 = vmatprep.mubr.f32.mxu1 %v183_v56 }
  0xe8   :  { %836 = vmatmul.mubr.f32.vlgmr.msra.gmra.mxu1 %v184_v57 }
  0xe9   :  { %877 = vmatprep.mubr.msk.f32.mxu1 %vm955_vm2, %v954_v6 }
 0x1a8   :  { %v837_v63 = vpop.f32.mrf.mxu1 }
 0x1a9   :  { %v280_v0 = vadd.f32 %v837_v63, %v670_v62 }
 0x1aa   :  { %v274_v1 = vpop.f32.mrf.mxu1 }
 0x1ab   :  { %v275_v2 = vadd.f32 %v670_v62, %v274_v1  ;;  %v284_v5 = vmax.f32 %v280_v0, 0.0 }
 0x1ad   :  { %v283_v3 = vmax.f32 %v275_v2, 0.0 }
 0x1af   :  { %870 = vmatprep.mubr.f32.mxu0 %v283_v3 }
 0x1b0   :  { %871 = vmatmul.mubr.f32.vlgmr.msra.gmra.mxu0 %v284_v5 }
 0x1b1   :  { %947 = vmatprep.mubr.msk.f32.mxu0 %vm955_vm2, %v954_v6  ;;  %916 = vmatpush3.msra.mxu0 %v582_v31 }
 0x1b2   :  { %917 = vmatprep.subr.mxu0 %v954_v6 }
 0x1b3   :  { %918 = vmatpush3.msra.mxu0 %v581_v32 }
 0x1b4   :  { %919 = vmatprep.subr.mxu0 %v954_v6 }
 0x1b5   :  { %920 = vmatpush3.msra.mxu0 %v580_v33 }
 0x1b6   :  { %921 = vmatprep.subr.mxu0 %v954_v6 }
 0x1b7   :  { %922 = vmatpush3.msra.mxu0 %v579_v34 }
 0x1b8   :  { %923 = vmatprep.subr.mxu0 %v954_v6 }
 0x1b9   :  { %924 = vmatpush3.msra.mxu0 %v578_v35 }
 0x1ba   :  { %925 = vmatprep.subr.mxu0 %v954_v6 }
 0x1bb   :  { %926 = vmatpush3.msra.mxu0 %v577_v36 }
 0x1bc   :  { %927 = vmatprep.subr.mxu0 %v954_v6 }
 0x1bd   :  { %928 = vmatpush3.msra.mxu0 %v576_v37 }
 0x1be   :  { %929 = vmatprep.subr.mxu0 %v954_v6 }
 0x1bf   :  { %930 = vmatpush3.msra.mxu0 %v575_v38 }
 0x1c0   :  { %931 = vmatprep.subr.mxu0 %v954_v6 }
 0x1c1   :  { %932 = vmatpush3.msra.mxu0 %v574_v39 }
 0x1c2   :  { %933 = vmatprep.subr.mxu0 %v954_v6 }
 0x1c3   :  { %934 = vmatpush3.msra.mxu0 %v573_v40 }
 0x1c4   :  { %935 = vmatprep.subr.mxu0 %v954_v6 }
 0x1c5   :  { %936 = vmatpush3.msra.mxu0 %v572_v41 }
 0x1c6   :  { %937 = vmatprep.subr.mxu0 %v954_v6 }
 0x1c7   :  { %938 = vmatpush3.msra.mxu0 %v571_v42 }
 0x1c8   :  { %939 = vmatprep.subr.mxu0 %v954_v6 }
 0x1c9   :  { %940 = vmatpush3.msra.mxu0 %v570_v43 }
 0x1ca   :  { %941 = vmatprep.subr.mxu0 %v954_v6 }
 0x1cb   :  { %942 = vmatpush3.msra.mxu0 %v569_v46 }
 0x1cc   :  { %943 = vmatprep.subr.mxu0 %v954_v6 }
 0x1cd   :  { %944 = vmatpush3.msra.mxu0 %v568_v47 }
 0x1ce   :  { %945 = vmatprep.subr.mxu0 %v954_v6 }
 0x1cf   :  { %946 = vmatpush3.msra.mxu0 %v567_v48 }
 0x270   :  { %v872_v9 = vpop.f32.mrf.mxu0 }
 0x271   :  { %v380_v10 = vadd.f32 %v872_v9, %v671_v7 }
 0x272   :  { %v374_v11 = vpop.f32.mrf.mxu0 }
 0x273   :  { %v384_v12 = vmax.f32 %v380_v10, 0.0  ;;  %v375_v13 = vadd.f32 %v671_v7, %v374_v11 }
 0x275   :  { %v383_v14 = vmax.f32 %v375_v13, 0.0  ;;  %874 = vmatpush3.msra.mxu1 %v384_v12 }
 0x276   :  { %875 = vmatprep.subr.mxu1 %v954_v6 }
 0x277   :  { %876 = vmatpush3.msra.mxu1 %v383_v14 }
 0x278   :  { %878 = vmatmul.mubr.msk.f32.vlgmr.msra.gmra.mxu1 %vm394_vm4, %v673_v15  ;;  %880 = vmatprep.subr.mxu1 %v954_v6 }
 0x279   :  { %881 = vmatpush3.msra.mxu1 %v488_v16  ;;  %912 = vmatprep.mubr.msk.f32.mxu1 %vm955_vm2, %v954_v6 }
 0x27a   :  { %882 = vmatprep.subr.mxu1 %v954_v6 }
 0x27b   :  { %883 = vmatpush3.msra.mxu1 %v487_v4 }
 0x27c   :  { %884 = vmatprep.subr.mxu1 %v954_v6 }
 0x27d   :  { %885 = vmatpush3.msra.mxu1 %v486_v17 }
 0x27e   :  { %886 = vmatprep.subr.mxu1 %v954_v6 }
 0x27f   :  { %887 = vmatpush3.msra.mxu1 %v485_v18 }
 0x280   :  { %888 = vmatprep.subr.mxu1 %v954_v6 }
 0x281   :  { %889 = vmatpush3.msra.mxu1 %v484_v19 }
 0x282   :  { %890 = vmatprep.subr.mxu1 %v954_v6 }
 0x283   :  { %891 = vmatpush3.msra.mxu1 %v483_v20 }
 0x284   :  { %892 = vmatprep.subr.mxu1 %v954_v6 }
 0x285   :  { %893 = vmatpush3.msra.mxu1 %v482_v21 }
 0x286   :  { %894 = vmatprep.subr.mxu1 %v954_v6 }
 0x287   :  { %895 = vmatpush3.msra.mxu1 %v481_v22 }
 0x288   :  { %896 = vmatprep.subr.mxu1 %v954_v6 }
 0x289   :  { %897 = vmatpush3.msra.mxu1 %v480_v23 }
 0x28a   :  { %898 = vmatprep.subr.mxu1 %v954_v6 }
 0x28b   :  { %899 = vmatpush3.msra.mxu1 %v479_v24 }
 0x28c   :  { %900 = vmatprep.subr.mxu1 %v954_v6 }
 0x28d   :  { %901 = vmatpush3.msra.mxu1 %v478_v25 }
 0x28e   :  { %902 = vmatprep.subr.mxu1 %v954_v6 }
 0x28f   :  { %903 = vmatpush3.msra.mxu1 %v477_v26 }
 0x290   :  { %904 = vmatprep.subr.mxu1 %v954_v6 }
 0x291   :  { %905 = vmatpush3.msra.mxu1 %v476_v27 }
 0x292   :  { %906 = vmatprep.subr.mxu1 %v954_v6 }
 0x293   :  { %907 = vmatpush3.msra.mxu1 %v475_v28 }
 0x294   :  { %908 = vmatprep.subr.mxu1 %v954_v6 }
 0x295   :  { %909 = vmatpush3.msra.mxu1 %v474_v29 }
 0x296   :  { %910 = vmatprep.subr.mxu1 %v954_v6 }
 0x297   :  { %911 = vmatpush3.msra.mxu1 %v473_v30 }
 0x338   :  { %v464_v44 = vpop.f32.mrf.mxu1 }
 0x339   :  { %913 = vmatmul.mubr.f32.vlgmr.msra.gmra.mxu1 %v464_v44 }
 0x33a   :  { %v879_v45 = vpop.f32.mrf.mxu1 }
 0x3f9   :  { %v562_v50 = vpop.f32.mrf.mxu1 }
 0x3fa   :  { %v563_v51 = vadd.f32 %v675_v49, %v562_v50 }
 0x3fb   :  { %v914_v52 = vpop.f32.mrf.mxu1 }
 0x3fc   :  { %v566_v53 = vmax.f32 %v563_v51, 0.0 }
 0x3fe   :  { %948 = vmatmul.mubr.f32.vlgmr.msra.gmra.mxu0 %v566_v53 }
 0x4be   :  { %v656_v55 = vpop.f32.mrf.mxu0 }
 0x4bf   :  { %v657_v56 = vadd.f32 %v676_v54, %v656_v55 }
 0x4c0   :  { %v949_v57 = vpop.f32.mrf.mxu0 }
 0x4c1   :  { %660 = vst [vmem:[%s1361_s13] sm:$0xff] %v657_v56 }

</bundles_post_ra>
